<compile_context>
chip_gen: v6e
topology: v6e:2x2x1
jax: 0.10.0
libtpu: 0.0.40
codegen_flags: <defaults>
</compile_context>

<pallas_src>
import functools
import math

import jax
import jax.numpy as jnp
import numpy as np
from jax.experimental import pallas as pl
from jax.experimental.pallas import tpu as pltpu

_BN_EPS = 1e-5


def _round_up(v, m):
    return ((v + m - 1) // m) * m


# ----------------------------- kernel ---------------------------------------


def _simclr_fwd_kernel(a_ref, x_ref, pool_ref, *refs, num_layers, d_pad, n_real):
    """Fused simclr forward: L x (GIN conv -> ReLU -> BatchNorm) -> per-layer
    global_add_pool -> concat -> proj_head (Linear, ReLU, Linear)."""
    gin = refs[:4 * num_layers]                       # [w1, b1, w2, b2] per layer
    p1w, p1b, p2w, p2b = refs[4 * num_layers:4 * num_layers + 4]
    y_ref = refs[4 * num_layers + 4]                  # output (b_pad, e_pad) f32
    pooled = refs[4 * num_layers + 5]                 # VMEM scratch (b_pad, e_pad) f32

    n_pad = a_ref.shape[0]
    row = jax.lax.broadcasted_iota(jnp.int32, (n_pad, 1), 0)
    valid = (row < n_real).astype(jnp.float32)        # real-node row mask
    inv_n = 1.0 / float(n_real)

    a = a_ref[...]            # bf16 (n_pad, n_pad), adjacency with +I self loops
    x = x_ref[...]            # bf16 node features
    pool = pool_ref[...]      # bf16 (b_pad, n_pad) graph-membership one-hot

    for l in range(num_layers):
        w1 = gin[4 * l][...]
        b1 = gin[4 * l + 1][...]
        w2 = gin[4 * l + 2][...]
        b2 = gin[4 * l + 3][...]

        # GINConv (eps=0): nn((A + I) @ x) with nn = Linear -> ReLU -> Linear,
        # followed by the encoder's outer F.relu.  bf16 MXU operands, f32 accum.
        agg = jnp.dot(a, x, preferred_element_type=jnp.float32)
        h = jnp.maximum(jnp.dot(agg.astype(jnp.bfloat16), w1,
                                preferred_element_type=jnp.float32) + b1, 0.0)
        h = jnp.maximum(jnp.dot(h.astype(jnp.bfloat16), w2,
                                preferred_element_type=jnp.float32) + b2, 0.0)

        # Training-mode BatchNorm1d (gamma=1, beta=0, eps=1e-5), biased variance,
        # statistics over REAL nodes only (padded rows masked out).
        hm = h * valid
        mean = jnp.sum(hm, axis=0, keepdims=True) * inv_n
        ex2 = jnp.sum(hm * h, axis=0, keepdims=True) * inv_n
        var = jnp.maximum(ex2 - mean * mean, 0.0)
        hbn = (h - mean) * jax.lax.rsqrt(var + _BN_EPS)

        x = hbn.astype(jnp.bfloat16)
        # global_add_pool for this layer straight into its 128-aligned concat slice.
        pooled[:, l * d_pad:(l + 1) * d_pad] = jnp.dot(
            pool, x, preferred_element_type=jnp.float32)

    # proj_head[0]: Linear(E, E) -> ReLU -> Linear(E, E)
    y = pooled[...]
    y = jnp.maximum(jnp.dot(y.astype(jnp.bfloat16), p1w[...],
                            preferred_element_type=jnp.float32) + p1b[...], 0.0)
    y_ref[...] = jnp.dot(y.astype(jnp.bfloat16), p2w[...],
                         preferred_element_type=jnp.float32) + p2b[...]


# ----------------------------- wrapper ---------------------------------------


def simclr_forward(x_pad, a_hat, pool_mat, params, *, n_real):
    """Single-launch fused forward.  Inputs are lane-padded dense operands."""
    num_layers = len(params["gin"])
    d_pad = params["gin"][0][2].shape[0]          # padded hidden width
    e_pad = d_pad * num_layers
    b_pad = pool_mat.shape[0]
    n_pad = a_hat.shape[0]
    assert n_pad <= 1024, "fused kernel assumes the padded graph fits VMEM"

    flat = []
    for layer_params in params["gin"]:
        flat.extend(layer_params)
    flat.extend(params["proj"])

    kern = functools.partial(_simclr_fwd_kernel, num_layers=num_layers,
                             d_pad=d_pad, n_real=n_real)
    return pl.pallas_call(
        kern,
        out_shape=jax.ShapeDtypeStruct((b_pad, e_pad), jnp.float32),
        scratch_shapes=[pltpu.VMEM((b_pad, e_pad), jnp.float32)],
    )(a_hat, x_pad, pool_mat, *flat)


# ----------------------------- params ----------------------------------------


def _xavier_uniform(key, fan_in, fan_out):
    bound = math.sqrt(6.0 / (fan_in + fan_out))
    return jax.random.uniform(key, (fan_in, fan_out), jnp.float32, -bound, bound)


def make_params(key, num_features, hidden_dim, num_gc_layers):
    """Torch-equivalent init (xavier_uniform weights, zero biases) in lane-padded
    buffers.  Weights are pre-cast to bf16 (MXU operands); biases stay f32.
    Padded weight rows/cols are zero so padded channels stay exactly zero."""
    f_pad = _round_up(num_features, 128)
    d_pad = _round_up(hidden_dim, 128)
    e_real = hidden_dim * num_gc_layers
    e_pad = d_pad * num_gc_layers
    # real concat-channel c lives at padded column (c // hidden)*d_pad + c % hidden
    ch = np.concatenate([np.arange(hidden_dim) + l * d_pad
                         for l in range(num_gc_layers)])

    keys = jax.random.split(key, 2 * num_gc_layers + 2)
    ki = 0
    gin = []
    for i in range(num_gc_layers):
        din, din_pad = (num_features, f_pad) if i == 0 else (hidden_dim, d_pad)
        w1 = jnp.zeros((din_pad, d_pad), jnp.float32)
        w1 = w1.at[:din, :hidden_dim].set(_xavier_uniform(keys[ki], din, hidden_dim))
        ki += 1
        w2 = jnp.zeros((d_pad, d_pad), jnp.float32)
        w2 = w2.at[:hidden_dim, :hidden_dim].set(
            _xavier_uniform(keys[ki], hidden_dim, hidden_dim))
        ki += 1
        gin.append((w1.astype(jnp.bfloat16), jnp.zeros((1, d_pad), jnp.float32),
                    w2.astype(jnp.bfloat16), jnp.zeros((1, d_pad), jnp.float32)))

    def proj_linear(k):
        w = jnp.zeros((e_pad, e_pad), jnp.float32)
        w = w.at[ch[:, None], ch[None, :]].set(_xavier_uniform(k, e_real, e_real))
        return w.astype(jnp.bfloat16)

    p1w = proj_linear(keys[ki]); ki += 1
    p2w = proj_linear(keys[ki]); ki += 1
    proj = (p1w, jnp.zeros((1, e_pad), jnp.float32),
            p2w, jnp.zeros((1, e_pad), jnp.float32))
    return {"gin": gin, "proj": proj}


# ----------------------------- driver -----------------------------------------


if __name__ == "__main__":
    # Logical problem: 2 graphs x 8 nodes (ring graphs), 4 input features,
    # hidden 32, 3 GIN layers, embedding_dim = 96.
    # Padded TPU shapes: N 16->128, F 4->128, D 32->128, E 96->384, B 2->8.
    N, B, F, D, L = 16, 2, 4, 32, 3
    nodes_per_graph = N // B

    n_pad = _round_up(max(N, 8), 128)
    f_pad = _round_up(F, 128)
    d_pad = _round_up(D, 128)
    b_pad = _round_up(max(B, 8), 8)

    key = jax.random.PRNGKey(0)
    key_x, key_p = jax.random.split(key)

    x = jax.random.normal(key_x, (N, F), jnp.float32)
    x_pad = (jnp.zeros((n_pad, f_pad), jnp.float32)
             .at[:N, :F].set(x).astype(jnp.bfloat16))

    # batch assignment and ring edges (both directions) within each graph
    batch = np.repeat(np.arange(B), nodes_per_graph)
    src, dst = [], []
    for g in range(B):
        base = g * nodes_per_graph
        for i in range(nodes_per_graph):
            u, v = base + i, base + (i + 1) % nodes_per_graph
            src += [u, v]
            dst += [v, u]
    edge_index = np.array([src, dst], dtype=np.int32)      # (2, num_edges)

    # Dense adjacency (glue): GIN's "+x" self term folded in as +I on real nodes.
    adj = np.zeros((n_pad, n_pad), np.float32)
    np.add.at(adj, (edge_index[1], edge_index[0]), 1.0)
    adj[np.arange(N), np.arange(N)] += 1.0
    a_hat = jnp.asarray(adj, dtype=jnp.bfloat16)

    # global_add_pool as a (B_pad, N_pad) one-hot matmul; padded nodes/graphs zero.
    onehot = np.zeros((n_pad, b_pad), np.float32)
    onehot[np.arange(N), batch] = 1.0
    pool_mat = jnp.asarray(onehot.T, dtype=jnp.bfloat16)

    params = make_params(key_p, F, D, L)

    fwd = jax.jit(functools.partial(simclr_forward, n_real=N))
    y_pad = jax.block_until_ready(fwd(x_pad, a_hat, pool_mat, params))

    # Extract the real (num_graphs, hidden*L) block from the padded output.
    ch = np.concatenate([np.arange(D) + l * d_pad for l in range(L)])
    y = np.asarray(y_pad)[:B][:, ch]
    assert y.shape == (B, D * L)
    assert np.all(np.isfinite(y))
    print("KERNEL_OK")
</pallas_src>

<mosaic_0001>
module attributes {stable_mosaic.version = 11 : i64} {
  func.func @_simclr_fwd_kernel(%arg0: memref<128x128xbf16, #tpu.memory_space<vmem>>, %arg1: memref<128x128xbf16, #tpu.memory_space<vmem>>, %arg2: memref<8x128xbf16, #tpu.memory_space<vmem>>, %arg3: memref<128x128xbf16, #tpu.memory_space<vmem>>, %arg4: memref<1x128xf32, #tpu.memory_space<vmem>>, %arg5: memref<128x128xbf16, #tpu.memory_space<vmem>>, %arg6: memref<1x128xf32, #tpu.memory_space<vmem>>, %arg7: memref<128x128xbf16, #tpu.memory_space<vmem>>, %arg8: memref<1x128xf32, #tpu.memory_space<vmem>>, %arg9: memref<128x128xbf16, #tpu.memory_space<vmem>>, %arg10: memref<1x128xf32, #tpu.memory_space<vmem>>, %arg11: memref<128x128xbf16, #tpu.memory_space<vmem>>, %arg12: memref<1x128xf32, #tpu.memory_space<vmem>>, %arg13: memref<128x128xbf16, #tpu.memory_space<vmem>>, %arg14: memref<1x128xf32, #tpu.memory_space<vmem>>, %arg15: memref<384x384xbf16, #tpu.memory_space<vmem>>, %arg16: memref<1x384xf32, #tpu.memory_space<vmem>>, %arg17: memref<384x384xbf16, #tpu.memory_space<vmem>>, %arg18: memref<1x384xf32, #tpu.memory_space<vmem>>, %arg19: memref<8x384xf32, #tpu.memory_space<vmem>>, %arg20: memref<8x384xf32, #tpu.memory_space<vmem>>) attributes {dimension_semantics = [], scalar_prefetch = 0 : i64, scratch_operands = 1 : i64, tpu.core_type = #tpu.core_type<tc>} {
    %0 = tpu.iota {dimensions = array<i32: 0>} : vector<128x1xi32>
    %c16_i32 = arith.constant 16 : i32
    %1 = vector.broadcast %c16_i32 : i32 to vector<128x1xi32>
    %2 = arith.cmpi slt, %0, %1 : vector<128x1xi32>
    %3 = arith.extui %2 : vector<128x1xi1> to vector<128x1xi32>
    %4 = arith.sitofp %3 : vector<128x1xi32> to vector<128x1xf32>
    %c0 = arith.constant 0 : index
    %c0_0 = arith.constant 0 : index
    %5 = vector.load %arg0[%c0, %c0_0] : memref<128x128xbf16, #tpu.memory_space<vmem>>, vector<128x128xbf16>
    %c0_1 = arith.constant 0 : index
    %c0_2 = arith.constant 0 : index
    %6 = vector.load %arg1[%c0_1, %c0_2] : memref<128x128xbf16, #tpu.memory_space<vmem>>, vector<128x128xbf16>
    %c0_3 = arith.constant 0 : index
    %c0_4 = arith.constant 0 : index
    %7 = vector.load %arg2[%c0_3, %c0_4] : memref<8x128xbf16, #tpu.memory_space<vmem>>, vector<8x128xbf16>
    %c0_5 = arith.constant 0 : index
    %c0_6 = arith.constant 0 : index
    %8 = vector.load %arg3[%c0_5, %c0_6] : memref<128x128xbf16, #tpu.memory_space<vmem>>, vector<128x128xbf16>
    %c0_7 = arith.constant 0 : index
    %c0_8 = arith.constant 0 : index
    %9 = vector.load %arg4[%c0_7, %c0_8] : memref<1x128xf32, #tpu.memory_space<vmem>>, vector<1x128xf32>
    %c0_9 = arith.constant 0 : index
    %c0_10 = arith.constant 0 : index
    %10 = vector.load %arg5[%c0_9, %c0_10] : memref<128x128xbf16, #tpu.memory_space<vmem>>, vector<128x128xbf16>
    %c0_11 = arith.constant 0 : index
    %c0_12 = arith.constant 0 : index
    %11 = vector.load %arg6[%c0_11, %c0_12] : memref<1x128xf32, #tpu.memory_space<vmem>>, vector<1x128xf32>
    %cst = arith.constant dense<0.000000e+00> : vector<128x128xf32>
    %12 = tpu.matmul %5, %6, %cst {dimension_numbers = #tpu.dot_dimension_numbers<[1], [0], [0], [1], [0, 0, 1, 1], [], []>} : vector<128x128xbf16>, vector<128x128xbf16>, vector<128x128xf32> -> vector<128x128xf32>
    %13 = arith.truncf %12 : vector<128x128xf32> to vector<128x128xbf16>
    %cst_13 = arith.constant dense<0.000000e+00> : vector<128x128xf32>
    %14 = tpu.matmul %13, %8, %cst_13 {dimension_numbers = #tpu.dot_dimension_numbers<[1], [0], [0], [1], [0, 0, 1, 1], [], []>} : vector<128x128xbf16>, vector<128x128xbf16>, vector<128x128xf32> -> vector<128x128xf32>
    %15 = vector.broadcast %9 : vector<1x128xf32> to vector<128x128xf32>
    %16 = arith.addf %14, %15 : vector<128x128xf32>
    %cst_14 = arith.constant 0.000000e+00 : f32
    %17 = vector.broadcast %cst_14 : f32 to vector<128x128xf32>
    %18 = arith.maximumf %16, %17 : vector<128x128xf32>
    %19 = arith.truncf %18 : vector<128x128xf32> to vector<128x128xbf16>
    %cst_15 = arith.constant dense<0.000000e+00> : vector<128x128xf32>
    %20 = tpu.matmul %19, %10, %cst_15 {dimension_numbers = #tpu.dot_dimension_numbers<[1], [0], [0], [1], [0, 0, 1, 1], [], []>} : vector<128x128xbf16>, vector<128x128xbf16>, vector<128x128xf32> -> vector<128x128xf32>
    %21 = vector.broadcast %11 : vector<1x128xf32> to vector<128x128xf32>
    %22 = arith.addf %20, %21 : vector<128x128xf32>
    %cst_16 = arith.constant 0.000000e+00 : f32
    %23 = vector.broadcast %cst_16 : f32 to vector<128x128xf32>
    %24 = arith.maximumf %22, %23 : vector<128x128xf32>
    %25 = vector.broadcast %4 : vector<128x1xf32> to vector<128x128xf32>
    %26 = arith.mulf %24, %25 : vector<128x128xf32>
    %cst_17 = arith.constant dense<0.000000e+00> : vector<128xf32>
    %27 = vector.multi_reduction <add>, %26, %cst_17 [0] : vector<128x128xf32> to vector<128xf32>
    %28 = vector.shape_cast %27 : vector<128xf32> to vector<1x128xf32>
    %cst_18 = arith.constant 6.250000e-02 : f32
    %29 = vector.broadcast %cst_18 : f32 to vector<1x128xf32>
    %30 = arith.mulf %28, %29 : vector<1x128xf32>
    %31 = arith.mulf %26, %24 : vector<128x128xf32>
    %cst_19 = arith.constant dense<0.000000e+00> : vector<128xf32>
    %32 = vector.multi_reduction <add>, %31, %cst_19 [0] : vector<128x128xf32> to vector<128xf32>
    %33 = vector.shape_cast %32 : vector<128xf32> to vector<1x128xf32>
    %cst_20 = arith.constant 6.250000e-02 : f32
    %34 = vector.broadcast %cst_20 : f32 to vector<1x128xf32>
    %35 = arith.mulf %33, %34 : vector<1x128xf32>
    %36 = arith.mulf %30, %30 : vector<1x128xf32>
    %37 = arith.subf %35, %36 : vector<1x128xf32>
    %cst_21 = arith.constant 0.000000e+00 : f32
    %38 = vector.broadcast %cst_21 : f32 to vector<1x128xf32>
    %39 = arith.maximumf %37, %38 : vector<1x128xf32>
    %40 = vector.broadcast %30 : vector<1x128xf32> to vector<128x128xf32>
    %41 = arith.subf %24, %40 : vector<128x128xf32>
    %cst_22 = arith.constant 9.99999974E-6 : f32
    %42 = vector.broadcast %cst_22 : f32 to vector<1x128xf32>
    %43 = arith.addf %39, %42 : vector<1x128xf32>
    %44 = math.rsqrt %43 : vector<1x128xf32>
    %45 = vector.broadcast %44 : vector<1x128xf32> to vector<128x128xf32>
    %46 = arith.mulf %41, %45 : vector<128x128xf32>
    %47 = arith.truncf %46 : vector<128x128xf32> to vector<128x128xbf16>
    %cst_23 = arith.constant dense<0.000000e+00> : vector<8x128xf32>
    %48 = tpu.matmul %7, %47, %cst_23 {dimension_numbers = #tpu.dot_dimension_numbers<[1], [0], [0], [1], [0, 0, 1, 1], [], []>} : vector<8x128xbf16>, vector<128x128xbf16>, vector<8x128xf32> -> vector<8x128xf32>
    %c0_24 = arith.constant 0 : index
    %c0_25 = arith.constant 0 : index
    %49 = vector.load %arg20[%c0_24, %c0_25] : memref<8x384xf32, #tpu.memory_space<vmem>>, vector<8x128xf32>
    tpu.vector_store %arg20[%c0_24, %c0_25], %48 {strides = array<i32>} : memref<8x384xf32, #tpu.memory_space<vmem>>, vector<8x128xf32>,
    %c0_26 = arith.constant 0 : index
    %c0_27 = arith.constant 0 : index
    %50 = vector.load %arg7[%c0_26, %c0_27] : memref<128x128xbf16, #tpu.memory_space<vmem>>, vector<128x128xbf16>
    %c0_28 = arith.constant 0 : index
    %c0_29 = arith.constant 0 : index
    %51 = vector.load %arg8[%c0_28, %c0_29] : memref<1x128xf32, #tpu.memory_space<vmem>>, vector<1x128xf32>
    %c0_30 = arith.constant 0 : index
    %c0_31 = arith.constant 0 : index
    %52 = vector.load %arg9[%c0_30, %c0_31] : memref<128x128xbf16, #tpu.memory_space<vmem>>, vector<128x128xbf16>
    %c0_32 = arith.constant 0 : index
    %c0_33 = arith.constant 0 : index
    %53 = vector.load %arg10[%c0_32, %c0_33] : memref<1x128xf32, #tpu.memory_space<vmem>>, vector<1x128xf32>
    %cst_34 = arith.constant dense<0.000000e+00> : vector<128x128xf32>
    %54 = tpu.matmul %5, %47, %cst_34 {dimension_numbers = #tpu.dot_dimension_numbers<[1], [0], [0], [1], [0, 0, 1, 1], [], []>} : vector<128x128xbf16>, vector<128x128xbf16>, vector<128x128xf32> -> vector<128x128xf32>
    %55 = arith.truncf %54 : vector<128x128xf32> to vector<128x128xbf16>
    %cst_35 = arith.constant dense<0.000000e+00> : vector<128x128xf32>
    %56 = tpu.matmul %55, %50, %cst_35 {dimension_numbers = #tpu.dot_dimension_numbers<[1], [0], [0], [1], [0, 0, 1, 1], [], []>} : vector<128x128xbf16>, vector<128x128xbf16>, vector<128x128xf32> -> vector<128x128xf32>
    %57 = vector.broadcast %51 : vector<1x128xf32> to vector<128x128xf32>
    %58 = arith.addf %56, %57 : vector<128x128xf32>
    %cst_36 = arith.constant 0.000000e+00 : f32
    %59 = vector.broadcast %cst_36 : f32 to vector<128x128xf32>
    %60 = arith.maximumf %58, %59 : vector<128x128xf32>
    %61 = arith.truncf %60 : vector<128x128xf32> to vector<128x128xbf16>
    %cst_37 = arith.constant dense<0.000000e+00> : vector<128x128xf32>
    %62 = tpu.matmul %61, %52, %cst_37 {dimension_numbers = #tpu.dot_dimension_numbers<[1], [0], [0], [1], [0, 0, 1, 1], [], []>} : vector<128x128xbf16>, vector<128x128xbf16>, vector<128x128xf32> -> vector<128x128xf32>
    %63 = vector.broadcast %53 : vector<1x128xf32> to vector<128x128xf32>
    %64 = arith.addf %62, %63 : vector<128x128xf32>
    %cst_38 = arith.constant 0.000000e+00 : f32
    %65 = vector.broadcast %cst_38 : f32 to vector<128x128xf32>
    %66 = arith.maximumf %64, %65 : vector<128x128xf32>
    %67 = vector.broadcast %4 : vector<128x1xf32> to vector<128x128xf32>
    %68 = arith.mulf %66, %67 : vector<128x128xf32>
    %cst_39 = arith.constant dense<0.000000e+00> : vector<128xf32>
    %69 = vector.multi_reduction <add>, %68, %cst_39 [0] : vector<128x128xf32> to vector<128xf32>
    %70 = vector.shape_cast %69 : vector<128xf32> to vector<1x128xf32>
    %cst_40 = arith.constant 6.250000e-02 : f32
    %71 = vector.broadcast %cst_40 : f32 to vector<1x128xf32>
    %72 = arith.mulf %70, %71 : vector<1x128xf32>
    %73 = arith.mulf %68, %66 : vector<128x128xf32>
    %cst_41 = arith.constant dense<0.000000e+00> : vector<128xf32>
    %74 = vector.multi_reduction <add>, %73, %cst_41 [0] : vector<128x128xf32> to vector<128xf32>
    %75 = vector.shape_cast %74 : vector<128xf32> to vector<1x128xf32>
    %cst_42 = arith.constant 6.250000e-02 : f32
    %76 = vector.broadcast %cst_42 : f32 to vector<1x128xf32>
    %77 = arith.mulf %75, %76 : vector<1x128xf32>
    %78 = arith.mulf %72, %72 : vector<1x128xf32>
    %79 = arith.subf %77, %78 : vector<1x128xf32>
    %cst_43 = arith.constant 0.000000e+00 : f32
    %80 = vector.broadcast %cst_43 : f32 to vector<1x128xf32>
    %81 = arith.maximumf %79, %80 : vector<1x128xf32>
    %82 = vector.broadcast %72 : vector<1x128xf32> to vector<128x128xf32>
    %83 = arith.subf %66, %82 : vector<128x128xf32>
    %cst_44 = arith.constant 9.99999974E-6 : f32
    %84 = vector.broadcast %cst_44 : f32 to vector<1x128xf32>
    %85 = arith.addf %81, %84 : vector<1x128xf32>
    %86 = math.rsqrt %85 : vector<1x128xf32>
    %87 = vector.broadcast %86 : vector<1x128xf32> to vector<128x128xf32>
    %88 = arith.mulf %83, %87 : vector<128x128xf32>
    %89 = arith.truncf %88 : vector<128x128xf32> to vector<128x128xbf16>
    %cst_45 = arith.constant dense<0.000000e+00> : vector<8x128xf32>
    %90 = tpu.matmul %7, %89, %cst_45 {dimension_numbers = #tpu.dot_dimension_numbers<[1], [0], [0], [1], [0, 0, 1, 1], [], []>} : vector<8x128xbf16>, vector<128x128xbf16>, vector<8x128xf32> -> vector<8x128xf32>
    %c0_46 = arith.constant 0 : index
    %c128 = arith.constant 128 : index
    %91 = vector.load %arg20[%c0_46, %c128] : memref<8x384xf32, #tpu.memory_space<vmem>>, vector<8x128xf32>
    tpu.vector_store %arg20[%c0_46, %c128], %90 {strides = array<i32>} : memref<8x384xf32, #tpu.memory_space<vmem>>, vector<8x128xf32>,
    %c0_47 = arith.constant 0 : index
    %c0_48 = arith.constant 0 : index
    %92 = vector.load %arg11[%c0_47, %c0_48] : memref<128x128xbf16, #tpu.memory_space<vmem>>, vector<128x128xbf16>
    %c0_49 = arith.constant 0 : index
    %c0_50 = arith.constant 0 : index
    %93 = vector.load %arg12[%c0_49, %c0_50] : memref<1x128xf32, #tpu.memory_space<vmem>>, vector<1x128xf32>
    %c0_51 = arith.constant 0 : index
    %c0_52 = arith.constant 0 : index
    %94 = vector.load %arg13[%c0_51, %c0_52] : memref<128x128xbf16, #tpu.memory_space<vmem>>, vector<128x128xbf16>
    %c0_53 = arith.constant 0 : index
    %c0_54 = arith.constant 0 : index
    %95 = vector.load %arg14[%c0_53, %c0_54] : memref<1x128xf32, #tpu.memory_space<vmem>>, vector<1x128xf32>
    %cst_55 = arith.constant dense<0.000000e+00> : vector<128x128xf32>
    %96 = tpu.matmul %5, %89, %cst_55 {dimension_numbers = #tpu.dot_dimension_numbers<[1], [0], [0], [1], [0, 0, 1, 1], [], []>} : vector<128x128xbf16>, vector<128x128xbf16>, vector<128x128xf32> -> vector<128x128xf32>
    %97 = arith.truncf %96 : vector<128x128xf32> to vector<128x128xbf16>
    %cst_56 = arith.constant dense<0.000000e+00> : vector<128x128xf32>
    %98 = tpu.matmul %97, %92, %cst_56 {dimension_numbers = #tpu.dot_dimension_numbers<[1], [0], [0], [1], [0, 0, 1, 1], [], []>} : vector<128x128xbf16>, vector<128x128xbf16>, vector<128x128xf32> -> vector<128x128xf32>
    %99 = vector.broadcast %93 : vector<1x128xf32> to vector<128x128xf32>
    %100 = arith.addf %98, %99 : vector<128x128xf32>
    %cst_57 = arith.constant 0.000000e+00 : f32
    %101 = vector.broadcast %cst_57 : f32 to vector<128x128xf32>
    %102 = arith.maximumf %100, %101 : vector<128x128xf32>
    %103 = arith.truncf %102 : vector<128x128xf32> to vector<128x128xbf16>
    %cst_58 = arith.constant dense<0.000000e+00> : vector<128x128xf32>
    %104 = tpu.matmul %103, %94, %cst_58 {dimension_numbers = #tpu.dot_dimension_numbers<[1], [0], [0], [1], [0, 0, 1, 1], [], []>} : vector<128x128xbf16>, vector<128x128xbf16>, vector<128x128xf32> -> vector<128x128xf32>
    %105 = vector.broadcast %95 : vector<1x128xf32> to vector<128x128xf32>
    %106 = arith.addf %104, %105 : vector<128x128xf32>
    %cst_59 = arith.constant 0.000000e+00 : f32
    %107 = vector.broadcast %cst_59 : f32 to vector<128x128xf32>
    %108 = arith.maximumf %106, %107 : vector<128x128xf32>
    %109 = vector.broadcast %4 : vector<128x1xf32> to vector<128x128xf32>
    %110 = arith.mulf %108, %109 : vector<128x128xf32>
    %cst_60 = arith.constant dense<0.000000e+00> : vector<128xf32>
    %111 = vector.multi_reduction <add>, %110, %cst_60 [0] : vector<128x128xf32> to vector<128xf32>
    %112 = vector.shape_cast %111 : vector<128xf32> to vector<1x128xf32>
    %cst_61 = arith.constant 6.250000e-02 : f32
    %113 = vector.broadcast %cst_61 : f32 to vector<1x128xf32>
    %114 = arith.mulf %112, %113 : vector<1x128xf32>
    %115 = arith.mulf %110, %108 : vector<128x128xf32>
    %cst_62 = arith.constant dense<0.000000e+00> : vector<128xf32>
    %116 = vector.multi_reduction <add>, %115, %cst_62 [0] : vector<128x128xf32> to vector<128xf32>
    %117 = vector.shape_cast %116 : vector<128xf32> to vector<1x128xf32>
    %cst_63 = arith.constant 6.250000e-02 : f32
    %118 = vector.broadcast %cst_63 : f32 to vector<1x128xf32>
    %119 = arith.mulf %117, %118 : vector<1x128xf32>
    %120 = arith.mulf %114, %114 : vector<1x128xf32>
    %121 = arith.subf %119, %120 : vector<1x128xf32>
    %cst_64 = arith.constant 0.000000e+00 : f32
    %122 = vector.broadcast %cst_64 : f32 to vector<1x128xf32>
    %123 = arith.maximumf %121, %122 : vector<1x128xf32>
    %124 = vector.broadcast %114 : vector<1x128xf32> to vector<128x128xf32>
    %125 = arith.subf %108, %124 : vector<128x128xf32>
    %cst_65 = arith.constant 9.99999974E-6 : f32
    %126 = vector.broadcast %cst_65 : f32 to vector<1x128xf32>
    %127 = arith.addf %123, %126 : vector<1x128xf32>
    %128 = math.rsqrt %127 : vector<1x128xf32>
    %129 = vector.broadcast %128 : vector<1x128xf32> to vector<128x128xf32>
    %130 = arith.mulf %125, %129 : vector<128x128xf32>
    %131 = arith.truncf %130 : vector<128x128xf32> to vector<128x128xbf16>
    %cst_66 = arith.constant dense<0.000000e+00> : vector<8x128xf32>
    %132 = tpu.matmul %7, %131, %cst_66 {dimension_numbers = #tpu.dot_dimension_numbers<[1], [0], [0], [1], [0, 0, 1, 1], [], []>} : vector<8x128xbf16>, vector<128x128xbf16>, vector<8x128xf32> -> vector<8x128xf32>
    %c0_67 = arith.constant 0 : index
    %c256 = arith.constant 256 : index
    %133 = vector.load %arg20[%c0_67, %c256] : memref<8x384xf32, #tpu.memory_space<vmem>>, vector<8x128xf32>
    tpu.vector_store %arg20[%c0_67, %c256], %132 {strides = array<i32>} : memref<8x384xf32, #tpu.memory_space<vmem>>, vector<8x128xf32>,
    %c0_68 = arith.constant 0 : index
    %c0_69 = arith.constant 0 : index
    %134 = vector.load %arg20[%c0_68, %c0_69] : memref<8x384xf32, #tpu.memory_space<vmem>>, vector<8x384xf32>
    %135 = arith.truncf %134 : vector<8x384xf32> to vector<8x384xbf16>
    %c0_70 = arith.constant 0 : index
    %c0_71 = arith.constant 0 : index
    %136 = vector.load %arg15[%c0_70, %c0_71] : memref<384x384xbf16, #tpu.memory_space<vmem>>, vector<384x384xbf16>
    %cst_72 = arith.constant dense<0.000000e+00> : vector<8x384xf32>
    %137 = tpu.matmul %135, %136, %cst_72 {dimension_numbers = #tpu.dot_dimension_numbers<[1], [0], [0], [1], [0, 0, 1, 1], [], []>} : vector<8x384xbf16>, vector<384x384xbf16>, vector<8x384xf32> -> vector<8x384xf32>
    %c0_73 = arith.constant 0 : index
    %c0_74 = arith.constant 0 : index
    %138 = vector.load %arg16[%c0_73, %c0_74] : memref<1x384xf32, #tpu.memory_space<vmem>>, vector<1x384xf32>
    %139 = vector.broadcast %138 : vector<1x384xf32> to vector<8x384xf32>
    %140 = arith.addf %137, %139 : vector<8x384xf32>
    %cst_75 = arith.constant 0.000000e+00 : f32
    %141 = vector.broadcast %cst_75 : f32 to vector<8x384xf32>
    %142 = arith.maximumf %140, %141 : vector<8x384xf32>
    %143 = arith.truncf %142 : vector<8x384xf32> to vector<8x384xbf16>
    %c0_76 = arith.constant 0 : index
    %c0_77 = arith.constant 0 : index
    %144 = vector.load %arg17[%c0_76, %c0_77] : memref<384x384xbf16, #tpu.memory_space<vmem>>, vector<384x384xbf16>
    %cst_78 = arith.constant dense<0.000000e+00> : vector<8x384xf32>
    %145 = tpu.matmul %143, %144, %cst_78 {dimension_numbers = #tpu.dot_dimension_numbers<[1], [0], [0], [1], [0, 0, 1, 1], [], []>} : vector<8x384xbf16>, vector<384x384xbf16>, vector<8x384xf32> -> vector<8x384xf32>
    %c0_79 = arith.constant 0 : index
    %c0_80 = arith.constant 0 : index
    %146 = vector.load %arg18[%c0_79, %c0_80] : memref<1x384xf32, #tpu.memory_space<vmem>>, vector<1x384xf32>
    %147 = vector.broadcast %146 : vector<1x384xf32> to vector<8x384xf32>
    %148 = arith.addf %145, %147 : vector<8x384xf32>
    %c0_81 = arith.constant 0 : index
    %c0_82 = arith.constant 0 : index
    %149 = vector.load %arg19[%c0_81, %c0_82] : memref<8x384xf32, #tpu.memory_space<vmem>>, vector<8x384xf32>
    tpu.vector_store %arg19[%c0_81, %c0_82], %148 {strides = array<i32>} : memref<8x384xf32, #tpu.memory_space<vmem>>, vector<8x384xf32>,
    return
  }
}

</mosaic_0001>

<bundles_post_ra>
// kernel: simclr_forward.1
= control target key start
LH: loop header
LB: loop body
LE: loop exit
PB: predicated region body
PF: predicated region fallthrough
CT: control target
= control target key end

     0   :  { %s5677_s0 = inlined_call_operand.hbm [shape: bf16[128,128], index: 0, kind: input, shape index: {}]   ;;  %s5678_s1 = inlined_call_operand.hbm [shape: bf16[128,128], index: 1, kind: input, shape index: {}]   ;;  %s5679_s2 = inlined_call_operand.hbm [shape: bf16[8,128], index: 2, kind: input, shape index: {}]   ;;  %s5680_s3 = inlined_call_operand.hbm [shape: bf16[128,128], index: 3, kind: input, shape index: {}]   ;;  %s5681_s4 = inlined_call_operand.vmem [shape: f32[1,128], index: 4, kind: input, shape index: {}]   ;;  %s5682_s5 = inlined_call_operand.hbm [shape: bf16[128,128], index: 5, kind: input, shape index: {}]   ;;  %s5683_s6 = inlined_call_operand.vmem [shape: f32[1,128], index: 6, kind: input, shape index: {}]   ;;  %s5684_s7 = inlined_call_operand.hbm [shape: bf16[128,128], index: 7, kind: input, shape index: {}]   ;;  %s5685_s8 = inlined_call_operand.vmem [shape: f32[1,128], index: 8, kind: input, shape index: {}]   ;;  %s5686_s9 = inlined_call_operand.hbm [shape: bf16[128,128], index: 9, kind: input, shape index: {}]   ;;  %s5687_s10 = inlined_call_operand.vmem [shape: f32[1,128], index: 10, kind: input, shape index: {}]   ;;  %s5688_s11 = inlined_call_operand.hbm [shape: bf16[128,128], index: 11, kind: input, shape index: {}]   ;;  %s5689_s12 = inlined_call_operand.vmem [shape: f32[1,128], index: 12, kind: input, shape index: {}]   ;;  %s5690_s13 = inlined_call_operand.hbm [shape: bf16[128,128], index: 13, kind: input, shape index: {}]   ;;  %s5691_s14 = inlined_call_operand.vmem [shape: f32[1,128], index: 14, kind: input, shape index: {}]   ;;  %s5692_s15 = inlined_call_operand.hbm [shape: bf16[384,384], index: 15, kind: input, shape index: {}]   ;;  %s5693_s16 = inlined_call_operand.vmem [shape: f32[1,384], index: 16, kind: input, shape index: {}]   ;;  %s5694_s17 = inlined_call_operand.hbm [shape: bf16[384,384], index: 17, kind: input, shape index: {}]   ;;  %s5695_s18 = inlined_call_operand.vmem [shape: f32[1,384], index: 18, kind: input, shape index: {}]   ;;  %s5696_s19 = inlined_call_operand.hbm [shape: f32[8,384], index: 19, kind: output, shape index: {}]  }
   0x1   :  { %5697 = sst [smem:[#allocation29_spill]] %s5677_s0 }
   0x2   :  { %5698 = sst [smem:[#allocation30_spill]] %s5678_s1 }
   0x3   :  { %5699 = sst [smem:[#allocation31_spill]] %s5679_s2 }
   0x4   :  { %5700 = sst [smem:[#allocation32_spill]] %s5680_s3 }
   0x5   :  { %24 = vsyncpa [#allocation4], 0 }
   0x6   :  { %25 = vsyncpa [#allocation7], 0 }
   0x7   :  { %26 = vsyncpa [#allocation10], 0 }
   0x8   :  { %27 = vsyncpa [#allocation13], 0 }
   0x9   :  { %28 = vsyncpa [#allocation16], 0 }
   0xa   :  { %29 = vsyncpa [#allocation19], 0 }
   0xb   :  { %30 = vsyncpa [#allocation5], 0  ;;  %s5066_s0 = smov [#allocation6]   ;;  %s5067_s20 = smov [#allocation9]  }
   0xc   :  { %s48_s30 = sshll.u32 %s5066_s0, 4  ;;  %s70_s21 = sshll.u32 %s5067_s20, 4  ;;  %s49_s30 = int_to_ptr.vmem [resolvable:$true] %s48_s30  ;;  %s71_s21 = int_to_ptr.vmem [resolvable:$true] %s70_s21 }
   0xd   :  { %s4820_s1 = scalar_lea.vmem %s49_s30, 1024  ;;  %p4825_p1 = scmp.lt.s32.totalorder %s49_s30, %s49_s30 }
   0xe   :  { %p4821_p0 = scmp.ne.s32.totalorder %s49_s30, %s4820_s1  ;;  %p4826_p2 = scmp.lt.s32.totalorder %s4820_s1, %s4820_s1 }
  0x10   :  { %p4827_p3 = por %p4826_p2, %p4825_p1 }
  0x12   :  { %p4828_p4 = pnand %p4827_p3, %p4821_p0 }
  0x14   :  { %4831 = shalt.err (!%p4828_p4)
}
  0x15   :  { %s5068_s22 = smov 64   ;;  %s5069_s2 = smov 4  }
  0x16   :  { %s5701_s25 = sld [smem:[#allocation30_spill]]  ;;  %s4840_s3 = scalar_lea.vmem %s71_s21, 1024 }
  0x17   :  { %p4841_p5 = scmp.ne.s32.totalorder %s71_s21, %s4840_s3  ;;  %p4845_p6 = scmp.lt.s32.totalorder %s71_s21, %s71_s21 }
  0x18   :  { %p4846_p7 = scmp.lt.s32.totalorder %s4840_s3, %s4840_s3 }
  0x1a   :  { %p4847_p8 = por %p4846_p7, %p4845_p6 }
  0x1c   :  { %54 = dma.hbm_to_vmem [thread:$0]  %s5701_s25, 1024, %s49_s30, [#allocation7], %s5068_s22, %s5068_s22, %s5069_s2  }
  0x1d   :  { %p4848_p9 = pnand %p4847_p8, %p4841_p5 }
  0x1f   :  { %4851 = shalt.err (!%p4848_p9)
}
  0x20   :  { %s5702_s28 = sld [smem:[#allocation32_spill]]  ;;  %s5070_s29 = smov [#allocation12]  }
  0x21   :  { %s98_s0 = sshll.u32 %s5070_s29, 4  ;;  %s5071_s20 = smov [#allocation15]   ;;  %s99_s0 = int_to_ptr.vmem [resolvable:$true] %s98_s0 }
  0x22   :  { %s126_s1 = sshll.u32 %s5071_s20, 4  ;;  %s4860_s30 = scalar_lea.vmem %s99_s0, 1024  ;;  %s127_s1 = int_to_ptr.vmem [resolvable:$true] %s126_s1 }
  0x23   :  { %p4861_p10 = scmp.ne.s32.totalorder %s99_s0, %s4860_s30  ;;  %p4865_p11 = scmp.lt.s32.totalorder %s99_s0, %s99_s0 }
  0x24   :  { %p4866_p12 = scmp.lt.s32.totalorder %s4860_s30, %s4860_s30 }
  0x26   :  { %76 = dma.hbm_to_vmem [thread:$0]  %s5702_s28, 1024, %s71_s21, [#allocation10], %s5068_s22, %s5068_s22, %s5069_s2  }
  0x27   :  { %p4867_p13 = por %p4866_p12, %p4865_p11 }
  0x29   :  { %p4868_p0 = pnand %p4867_p13, %p4861_p10 }
  0x2b   :  { %4871 = shalt.err (!%p4868_p0)
}
  0x2c   :  { %104 = dma.hbm_to_vmem [thread:$0]  %s5684_s7, 1024, %s99_s0, [#allocation13], %s5068_s22, %s5068_s22, %s5069_s2  }
  0x2d   :  { %s4880_s21 = scalar_lea.vmem %s127_s1, 1024  ;;  %p4885_p2 = scmp.lt.s32.totalorder %s127_s1, %s127_s1 }
  0x2e   :  { %p4881_p1 = scmp.ne.s32.totalorder %s127_s1, %s4880_s21  ;;  %p4886_p3 = scmp.lt.s32.totalorder %s4880_s21, %s4880_s21 }
  0x30   :  { %p4887_p4 = por %p4886_p3, %p4885_p2 }
  0x32   :  { %p4888_p5 = pnand %p4887_p4, %p4881_p1 }
  0x34   :  { %4891 = shalt.err (!%p4888_p5)
}
  0x35   :  { %132 = dma.hbm_to_vmem [thread:$0]  %s5688_s11, 1024, %s127_s1, [#allocation16], %s5068_s22, %s5068_s22, %s5069_s2  }
  0x36   :  { %s5072_s26 = smov [#allocation18]  }
  0x37   :  { %s154_s27 = sshll.u32 %s5072_s26, 4  ;;  %s155_s27 = int_to_ptr.vmem [resolvable:$true] %s154_s27 }
  0x38   :  { %s4900_s28 = scalar_lea.vmem %s155_s27, 9216  ;;  %p4905_p7 = scmp.lt.s32.totalorder %s155_s27, %s155_s27 }
  0x39   :  { %p4901_p6 = scmp.ne.s32.totalorder %s155_s27, %s4900_s28  ;;  %p4906_p8 = scmp.lt.s32.totalorder %s4900_s28, %s4900_s28 }
  0x3b   :  { %p4907_p9 = por %p4906_p8, %p4905_p7 }
  0x3d   :  { %p4908_p10 = pnand %p4907_p9, %p4901_p6 }
  0x3f   :  { %4911 = shalt.err (!%p4908_p10)
}
  0x40   :  { %s5073_s7 = smov 192   ;;  %s5074_s29 = smov 12  }
  0x41   :  { %160 = dma.hbm_to_vmem [thread:$0]  %s5692_s15, 9216, %s155_s27, [#allocation19], %s5073_s7, %s5073_s7, %s5074_s29  }
  0x42   :  { %s5075_s11 = smov [#allocation3]   ;;  %s5076_s30 = smov [#allocation8]  }
  0x43   :  { %s36_s1 = sshll.u32 %s5075_s11, 4  ;;  %s61_s23 = sshll.u32 %s5076_s30, 4  ;;  %s37_s1 = int_to_ptr.vmem [resolvable:$true] %s36_s1  ;;  %s62_s23 = int_to_ptr.vmem [resolvable:$true] %s61_s23 }
  0x44   :  { %s4920_s24 = scalar_lea.vmem %s37_s1, 1024  ;;  %p4925_p12 = scmp.lt.s32.totalorder %s37_s1, %s37_s1 }
  0x45   :  { %p4921_p11 = scmp.ne.s32.totalorder %s37_s1, %s4920_s24  ;;  %p4926_p13 = scmp.lt.s32.totalorder %s4920_s24, %s4920_s24 }
  0x47   :  { %p4927_p0 = por %p4926_p13, %p4925_p12 }
  0x49   :  { %p4928_p1 = pnand %p4927_p0, %p4921_p11 }
  0x4b   :  { %4931 = shalt.err (!%p4928_p1)
}
  0x4c   :  { %s5703_s3 = sld [smem:[#allocation29_spill]]  ;;  %s4940_s15 = scalar_lea.vmem %s62_s23, 64 }
  0x4d   :  { %p4941_p2 = scmp.ne.s32.totalorder %s62_s23, %s4940_s15  ;;  %p4945_p3 = scmp.lt.s32.totalorder %s62_s23, %s62_s23 }
  0x4e   :  { %p4946_p4 = scmp.lt.s32.totalorder %s4940_s15, %s4940_s15 }
  0x50   :  { %p4947_p5 = por %p4946_p4, %p4945_p3 }
  0x52   :  { %42 = dma.hbm_to_vmem [thread:$0]  %s5703_s3, 1024, %s37_s1, [#allocation4], %s5068_s22, %s5068_s22, %s5069_s2  }
  0x53   :  { %p4948_p6 = pnand %p4947_p5, %p4941_p2 }
  0x55   :  { %4951 = shalt.err (!%p4948_p6)
}
  0x56   :  { %s5704_s28 = sld [smem:[#allocation31_spill]]  ;;  %s5077_s0 = smov [#allocation11]  }
  0x57   :  { %s84_s20 = sshll.u32 %s5077_s0, 4  ;;  %s5078_s11 = smov [#allocation14]   ;;  %s85_s20 = int_to_ptr.vmem [resolvable:$true] %s84_s20 }
  0x58   :  { %s112_s30 = sshll.u32 %s5078_s11, 4  ;;  %s4960_s24 = scalar_lea.vmem %s85_s20, 1024  ;;  %s113_s30 = int_to_ptr.vmem [resolvable:$true] %s112_s30 }
  0x59   :  { %p4961_p7 = scmp.ne.s32.totalorder %s85_s20, %s4960_s24  ;;  %p4965_p8 = scmp.lt.s32.totalorder %s85_s20, %s85_s20 }
  0x5a   :  { %p4966_p9 = scmp.lt.s32.totalorder %s4960_s24, %s4960_s24 }
  0x5c   :  { %64 = dma.hbm_to_vmem [thread:$0]  %s5704_s28, 64, %s62_s23, [#allocation7]  }
  0x5d   :  { %p4967_p10 = por %p4966_p9, %p4965_p8 }
  0x5f   :  { %p4968_p11 = pnand %p4967_p10, %p4961_p7 }
  0x61   :  { %4971 = shalt.err (!%p4968_p11)
}
  0x62   :  { %90 = dma.hbm_to_vmem [thread:$0]  %s5682_s5, 1024, %s85_s20, [#allocation10], %s5068_s22, %s5068_s22, %s5069_s2  }
  0x63   :  { %s4980_s23 = scalar_lea.vmem %s113_s30, 1024  ;;  %p4985_p13 = scmp.lt.s32.totalorder %s113_s30, %s113_s30 }
  0x64   :  { %p4981_p12 = scmp.ne.s32.totalorder %s113_s30, %s4980_s23  ;;  %p4986_p0 = scmp.lt.s32.totalorder %s4980_s23, %s4980_s23 }
  0x66   :  { %p4987_p1 = por %p4986_p0, %p4985_p13 }
  0x68   :  { %p4988_p2 = pnand %p4987_p1, %p4981_p12 }
  0x6a   :  { %4991 = shalt.err (!%p4988_p2)
}
  0x6b   :  { %118 = dma.hbm_to_vmem [thread:$0]  %s5686_s9, 1024, %s113_s30, [#allocation13], %s5068_s22, %s5068_s22, %s5069_s2  }
  0x6c   :  { %s5079_s15 = smov [#allocation17]   ;;  %s5080_s27 = smov [#allocation20]  }
  0x6d   :  { %s140_s26 = sshll.u32 %s5079_s15, 4  ;;  %s168_s5 = sshll.u32 %s5080_s27, 4  ;;  %s141_s26 = int_to_ptr.vmem [resolvable:$true] %s140_s26  ;;  %s169_s5 = int_to_ptr.vmem [resolvable:$true] %s168_s5 }
  0x6e   :  { %s5000_s28 = scalar_lea.vmem %s141_s26, 1024  ;;  %p5005_p4 = scmp.lt.s32.totalorder %s141_s26, %s141_s26 }
  0x6f   :  { %p5001_p3 = scmp.ne.s32.totalorder %s141_s26, %s5000_s28  ;;  %p5006_p5 = scmp.lt.s32.totalorder %s5000_s28, %s5000_s28 }
  0x71   :  { %p5007_p6 = por %p5006_p5, %p5005_p4 }
  0x73   :  { %p5008_p7 = pnand %p5007_p6, %p5001_p3 }
  0x75   :  { %5011 = shalt.err (!%p5008_p7)
}
  0x76   :  { %146 = dma.hbm_to_vmem [thread:$0]  %s5690_s13, 1024, %s141_s26, [#allocation16], %s5068_s22, %s5068_s22, %s5069_s2  }
  0x77   :  { %s5020_s9 = scalar_lea.vmem %s169_s5, 9216  ;;  %p5025_p9 = scmp.lt.s32.totalorder %s169_s5, %s169_s5 }
  0x78   :  { %p5021_p8 = scmp.ne.s32.totalorder %s169_s5, %s5020_s9  ;;  %p5026_p10 = scmp.lt.s32.totalorder %s5020_s9, %s5020_s9 }
  0x7a   :  { %p5027_p11 = por %p5026_p10, %p5025_p9 }
  0x7c   :  { %p5028_p12 = pnand %p5027_p11, %p5021_p8 }
  0x7e   :  { %5031 = shalt.err (!%p5028_p12)
}
  0x7f   :  { %174 = dma.hbm_to_vmem [thread:$0]  %s5694_s17, 9216, %s169_s5, [#allocation19], %s5073_s7, %s5073_s7, %s5074_s29  }
  0x80   :  { %5052 = dma.done.wait [#allocation4], 1024  }
  0x81   :  { %5053 = vsyncadd [#allocation4], 4294966272 }
  0x82   :  { %5054 = dma.done.wait [#allocation7], 1088  }
  0x83   :  { %5055 = vsyncadd [#allocation7], 4294966208 }
  0x84   :  { %5056 = dma.done.wait [#allocation10], 2048  }
  0x85   :  { %5057 = vsyncadd [#allocation10], 4294965248 }
  0x86   :  { %5058 = dma.done.wait [#allocation13], 2048  }
  0x87   :  { %5059 = vsyncadd [#allocation13], 4294965248 }
  0x88   :  { %5060 = dma.done.wait [#allocation16], 2048  }
  0x89   :  { %5061 = vsyncadd [#allocation16], 4294965248 }
  0x8a   :  { %5062 = dma.done.wait [#allocation19], 18432  }
  0x8b   :  { %5063 = vsyncadd [#allocation19], 4294948864  ;;  %v4541_v0 = vld [vmem:[#allocation6 + $0x38] sm:$0xff]   ;;  %v4542_v1 = vld [vmem:[#allocation6 + $0x30] sm:$0xff]   ;;  %vm5082_vm0 = vmmov 0  }
  0x8c   :  { %4134 = vmatprep.subr.bf16.mxu0 %v4541_v0  ;;  %v4543_v2 = vld [vmem:[#allocation6 + $0x28] sm:$0xff]   ;;  %v4544_v3 = vld [vmem:[#allocation6 + $0x20] sm:$0xff]   ;;  %v4545_v5 = vld [vmem:[#allocation6 + $0x18] sm:$0xff]  }
  0x8d   :  { %4135 = vmatpush3.bf16.msra.mxu0 %v4541_v0  ;;  %v5248_v4 = vld [vmem:[#allocation3] sm:$0xff]   ;;  %v4546_v6 = vld [vmem:[#allocation6 + $0x10] sm:$0xff]   ;;  %v4547_v9 = vld [vmem:[#allocation6 + $0x8] sm:$0xff]  }
  0x8e   :  { %4136 = vmatprep.subr.bf16.mxu0 %v4542_v1  ;;  %4150 = vmatprep.mubr.bf16.mxu0 %v5248_v4  ;;  %v4557_v7 = vld [vmem:[#allocation9 + $0x38] sm:$0xff]   ;;  %v4558_v8 = vld [vmem:[#allocation9 + $0x30] sm:$0xff]   ;;  %v4559_v10 = vld [vmem:[#allocation9 + $0x28] sm:$0xff]  }
  0x8f   :  { %4166 = vmatprep.subr.bf16.mxu1 %v4557_v7  ;;  %v4548_v11 = vld [vmem:[#allocation6] sm:$0xff]   ;;  %v4550_v14 = vld [vmem:[#allocation3 + $0x8] sm:$0xff]   ;;  %v4551_v15 = vld [vmem:[#allocation3 + $0x10] sm:$0xff]  }
  0x90   :  { %4167 = vmatpush3.bf16.msra.mxu1 %v4557_v7  ;;  %v4560_v12 = vld [vmem:[#allocation9 + $0x20] sm:$0xff]   ;;  %v4561_v13 = vld [vmem:[#allocation9 + $0x18] sm:$0xff]   ;;  %v4562_v16 = vld [vmem:[#allocation9 + $0x10] sm:$0xff]  }
  0x91   :  { %4137 = vmatpush3.bf16.msra.mxu0 %v4542_v1  ;;  %4168 = vmatprep.subr.bf16.mxu1 %v4558_v8  ;;  %v4552_v17 = vld [vmem:[#allocation3 + $0x18] sm:$0xff]   ;;  %v4553_v18 = vld [vmem:[#allocation3 + $0x20] sm:$0xff]   ;;  %v4554_v19 = vld [vmem:[#allocation3 + $0x28] sm:$0xff]  }
  0x92   :  { %4138 = vmatprep.subr.bf16.mxu0 %v4543_v2  ;;  %v4555_v20 = vld [vmem:[#allocation3 + $0x30] sm:$0xff]   ;;  %v4556_v21 = vld [vmem:[#allocation3 + $0x38] sm:$0xff]   ;;  %v4564_v23 = vld [vmem:[#allocation9] sm:$0xff]  }
  0x93   :  { %v4563_v22 = vld [vmem:[#allocation9 + $0x8] sm:$0xff]   ;;  %v4565_v24 = vld [vmem:[#allocation11 + $0x38] sm:$0xff]   ;;  %v4566_v25 = vld [vmem:[#allocation11 + $0x30] sm:$0xff]  }
  0x94   :  { %4169 = vmatpush3.bf16.msra.mxu1 %v4558_v8  ;;  %v4567_v26 = vld [vmem:[#allocation11 + $0x28] sm:$0xff]   ;;  %v4568_v27 = vld [vmem:[#allocation11 + $0x20] sm:$0xff]   ;;  %v4569_v28 = vld [vmem:[#allocation11 + $0x18] sm:$0xff]  }
  0x95   :  { %4139 = vmatpush3.bf16.msra.mxu0 %v4543_v2  ;;  %4170 = vmatprep.subr.bf16.mxu1 %v4559_v10  ;;  %v4570_v53 = vld [vmem:[#allocation11 + $0x10] sm:$0xff]   ;;  %v4571_v54 = vld [vmem:[#allocation11 + $0x8] sm:$0xff]   ;;  %v4572_v55 = vld [vmem:[#allocation11] sm:$0xff]  }
  0x96   :  { %4140 = vmatprep.subr.bf16.mxu0 %v4544_v3  ;;  %v3703_v58 = vld [vmem:[%s5681_s4] ss:$0 sm:$0xff] }
  0x98   :  { %4171 = vmatpush3.bf16.msra.mxu1 %v4559_v10 }
  0x99   :  { %4141 = vmatpush3.bf16.msra.mxu0 %v4544_v3  ;;  %4172 = vmatprep.subr.bf16.mxu1 %v4560_v12 }
  0x9a   :  { %4142 = vmatprep.subr.bf16.mxu0 %v4545_v5 }
  0x9c   :  { %4173 = vmatpush3.bf16.msra.mxu1 %v4560_v12 }
  0x9d   :  { %4143 = vmatpush3.bf16.msra.mxu0 %v4545_v5  ;;  %4174 = vmatprep.subr.bf16.mxu1 %v4561_v13 }
  0x9e   :  { %4144 = vmatprep.subr.bf16.mxu0 %v4546_v6 }
  0xa0   :  { %4175 = vmatpush3.bf16.msra.mxu1 %v4561_v13 }
  0xa1   :  { %4145 = vmatpush3.bf16.msra.mxu0 %v4546_v6  ;;  %4176 = vmatprep.subr.bf16.mxu1 %v4562_v16 }
  0xa2   :  { %4146 = vmatprep.subr.bf16.mxu0 %v4547_v9 }
  0xa4   :  { %4177 = vmatpush3.bf16.msra.mxu1 %v4562_v16 }
  0xa5   :  { %4147 = vmatpush3.bf16.msra.mxu0 %v4547_v9  ;;  %4178 = vmatprep.subr.bf16.mxu1 %v4563_v22 }
  0xa6   :  { %4148 = vmatprep.subr.bf16.mxu0 %v4548_v11 }
  0xa8   :  { %4179 = vmatpush3.bf16.msra.mxu1 %v4563_v22 }
  0xa9   :  { %4149 = vmatpush3.bf16.msra.mxu0 %v4548_v11  ;;  %4180 = vmatprep.subr.bf16.mxu1 %v4564_v23 }
  0xaa   :  { %4198 = vmatprep.subr.bf16.mxu0 %v4565_v24 }
  0xac   :  { %4151 = vmatmul.mubr.bf16.vlgmr.msra.gmra.mxu0 %v4550_v14  ;;  %4181 = vmatpush3.bf16.msra.mxu1 %v4564_v23 }
  0xad   :  { %4154 = vmatprep.mubr.bf16.mxu0 %v4551_v15  ;;  %4199 = vmatpush3.bf16.msra.mxu0 %v4565_v24 }
  0xae   :  { %4200 = vmatprep.subr.bf16.mxu0 %v4566_v25 }
  0xb1   :  { %4201 = vmatpush3.bf16.msra.mxu0 %v4566_v25 }
  0xb2   :  { %4202 = vmatprep.subr.bf16.mxu0 %v4567_v26 }
  0xb4   :  { %4155 = vmatmul.mubr.bf16.gmra.mxu0 %v4552_v17 }
  0xb5   :  { %4158 = vmatprep.mubr.bf16.mxu0 %v4553_v18  ;;  %4203 = vmatpush3.bf16.msra.mxu0 %v4567_v26 }
  0xb6   :  { %4204 = vmatprep.subr.bf16.mxu0 %v4568_v27 }
  0xb9   :  { %4205 = vmatpush3.bf16.msra.mxu0 %v4568_v27 }
  0xba   :  { %4206 = vmatprep.subr.bf16.mxu0 %v4569_v28 }
  0xbc   :  { %4159 = vmatmul.mubr.bf16.gmra.mxu0 %v4554_v19 }
  0xbd   :  { %4162 = vmatprep.mubr.bf16.mxu0 %v4555_v20  ;;  %4207 = vmatpush3.bf16.msra.mxu0 %v4569_v28 }
  0xbe   :  { %4208 = vmatprep.subr.bf16.mxu0 %v4570_v53 }
  0xc1   :  { %4209 = vmatpush3.bf16.msra.mxu0 %v4570_v53 }
  0xc2   :  { %4210 = vmatprep.subr.bf16.mxu0 %v4571_v54 }
  0xc4   :  { %4163 = vmatmul.mubr.bf16.gmra.mxu0 %v4556_v21 }
  0xc5   :  { %4211 = vmatpush3.bf16.msra.mxu0 %v4571_v54 }
  0xc6   :  { %4212 = vmatprep.subr.bf16.mxu0 %v4572_v55 }
  0xc9   :  { %4213 = vmatpush3.bf16.msra.mxu0 %v4572_v55 }
 0x16c   :  { %v4152_v29 = vpop.f32.mrf.mxu0 }
 0x16e   :  { %v473_v30 = vpop.f32.mrf.mxu0 }
 0x170   :  { %v4153_v31 = vpop.f32.mrf.mxu0 }
 0x171   :  { %v537_v34 = vpack.c.bf16 %v4153_v31, %v4152_v29 }
 0x172   :  { %v476_v32 = vpop.f32.mrf.mxu0 }
 0x173   :  { %v536_v33 = vpack.c.bf16 %v476_v32, %v473_v30 }
 0x174   :  { %v4156_v35 = vpop.f32.mrf.mxu0 }
 0x175   :  { %4182 = vmatprep.mubr.bf16.mxu1 %v536_v33 }
 0x176   :  { %v489_v36 = vpop.f32.mrf.mxu0  ;;  %4183 = vmatmul.mubr.bf16.vlgmr.msra.gmra.mxu1 %v537_v34 }
 0x178   :  { %v4157_v37 = vpop.f32.mrf.mxu0 }
 0x179   :  { %v539_v40 = vpack.c.bf16 %v4157_v37, %v4156_v35 }
 0x17a   :  { %v492_v38 = vpop.f32.mrf.mxu0 }
 0x17b   :  { %v538_v39 = vpack.c.bf16 %v492_v38, %v489_v36 }
 0x17c   :  { %v4160_v41 = vpop.f32.mrf.mxu0 }
 0x17d   :  { %4186 = vmatprep.mubr.bf16.mxu1 %v538_v39 }
 0x17e   :  { %v505_v42 = vpop.f32.mrf.mxu0  ;;  %4187 = vmatmul.mubr.bf16.gmra.mxu1 %v539_v40 }
 0x180   :  { %v4161_v43 = vpop.f32.mrf.mxu0 }
 0x181   :  { %v541_v46 = vpack.c.bf16 %v4161_v43, %v4160_v41 }
 0x182   :  { %v508_v44 = vpop.f32.mrf.mxu0 }
 0x183   :  { %v540_v45 = vpack.c.bf16 %v508_v44, %v505_v42 }
 0x184   :  { %v4164_v47 = vpop.f32.mrf.mxu0 }
 0x185   :  { %4190 = vmatprep.mubr.bf16.mxu1 %v540_v45 }
 0x186   :  { %v521_v48 = vpop.f32.mrf.mxu0  ;;  %4191 = vmatmul.mubr.bf16.gmra.mxu1 %v541_v46 }
 0x188   :  { %v4165_v49 = vpop.f32.mrf.mxu0 }
 0x189   :  { %v543_v52 = vpack.c.bf16 %v4165_v49, %v4164_v47 }
 0x18a   :  { %v524_v50 = vpop.f32.mrf.mxu0 }
 0x18b   :  { %v542_v51 = vpack.c.bf16 %v524_v50, %v521_v48  ;;  %v5081_v50 = vmov 0.0  }
 0x18c   :  { %4230 = vmatprep.subr.bf16.mxu1 %v5081_v50 }
 0x18d   :  { %4194 = vmatprep.mubr.bf16.mxu1 %v542_v51  ;;  %v5259_v51 = vld [vmem:[%s5683_s6] ss:$0 sm:$0xff] }
 0x18e   :  { %4195 = vmatmul.mubr.bf16.gmra.mxu1 %v543_v52 }
 0x18f   :  { %4246 = vmatprep.mubr.msk.bf16.mxu1 %vm5082_vm0, %v5081_v50 }
 0x236   :  { %v4184_v56 = vpop.f32.mrf.mxu1 }
 0x237   :  { %v641_v62 = vadd.f32 %v4184_v56, %v3703_v58 }
 0x238   :  { %v632_v57 = vpop.f32.mrf.mxu1 }
 0x239   :  { %v633_v60 = vadd.f32 %v3703_v58, %v632_v57  ;;  %v697_v6 = vmax.f32 %v641_v62, 0.0 }
 0x23a   :  { %v4185_v59 = vpop.f32.mrf.mxu1 }
 0x23b   :  { %v644_v61 = vadd.f32 %v4185_v59, %v3703_v58  ;;  %v695_v3 = vmax.f32 %v633_v60, 0.0 }
 0x23c   :  { %v635_v63 = vpop.f32.mrf.mxu1 }
 0x23d   :  { %v636_v0 = vadd.f32 %v3703_v58, %v635_v63  ;;  %v698_v1 = vmax.f32 %v644_v61, 0.0 }
 0x23e   :  { %v4188_v2 = vpop.f32.mrf.mxu1 }
 0x23f   :  { %v696_v5 = vmax.f32 %v636_v0, 0.0  ;;  %v712_v9 = vpack.c.bf16 %v698_v1, %v697_v6  ;;  %v657_v13 = vadd.f32 %v4188_v2, %v3703_v58 }
 0x240   :  { %v648_v7 = vpop.f32.mrf.mxu1 }
 0x241   :  { %v711_v8 = vpack.c.bf16 %v696_v5, %v695_v3  ;;  %v649_v11 = vadd.f32 %v3703_v58, %v648_v7  ;;  %v701_v20 = vmax.f32 %v657_v13, 0.0 }
 0x242   :  { %v4189_v10 = vpop.f32.mrf.mxu1 }
 0x243   :  { %v660_v12 = vadd.f32 %v4189_v10, %v3703_v58  ;;  %4214 = vmatprep.mubr.bf16.mxu0 %v711_v8  ;;  %v699_v18 = vmax.f32 %v649_v11, 0.0 }
 0x244   :  { %v651_v14 = vpop.f32.mrf.mxu1  ;;  %4215 = vmatmul.mubr.bf16.vlgmr.msra.gmra.mxu0 %v712_v9 }
 0x245   :  { %v652_v15 = vadd.f32 %v3703_v58, %v651_v14  ;;  %v702_v16 = vmax.f32 %v660_v12, 0.0 }
 0x246   :  { %v4192_v17 = vpop.f32.mrf.mxu1 }
 0x247   :  { %v700_v19 = vmax.f32 %v652_v15, 0.0  ;;  %v714_v23 = vpack.c.bf16 %v702_v16, %v701_v20  ;;  %v673_v27 = vadd.f32 %v4192_v17, %v3703_v58 }
 0x248   :  { %v664_v21 = vpop.f32.mrf.mxu1 }
 0x249   :  { %v713_v22 = vpack.c.bf16 %v700_v19, %v699_v18  ;;  %v665_v25 = vadd.f32 %v3703_v58, %v664_v21  ;;  %v705_v34 = vmax.f32 %v673_v27, 0.0 }
 0x24a   :  { %v4193_v24 = vpop.f32.mrf.mxu1 }
 0x24b   :  { %v676_v26 = vadd.f32 %v4193_v24, %v3703_v58  ;;  %4218 = vmatprep.mubr.bf16.mxu0 %v713_v22  ;;  %v703_v32 = vmax.f32 %v665_v25, 0.0 }
 0x24c   :  { %v667_v28 = vpop.f32.mrf.mxu1  ;;  %4219 = vmatmul.mubr.bf16.gmra.mxu0 %v714_v23 }
 0x24d   :  { %v668_v29 = vadd.f32 %v3703_v58, %v667_v28  ;;  %v706_v30 = vmax.f32 %v676_v26, 0.0 }
 0x24e   :  { %v4196_v31 = vpop.f32.mrf.mxu1 }
 0x24f   :  { %v704_v33 = vmax.f32 %v668_v29, 0.0  ;;  %v716_v37 = vpack.c.bf16 %v706_v30, %v705_v34  ;;  %v689_v41 = vadd.f32 %v4196_v31, %v3703_v58 }
 0x250   :  { %v680_v35 = vpop.f32.mrf.mxu1 }
 0x251   :  { %v715_v36 = vpack.c.bf16 %v704_v33, %v703_v32  ;;  %v681_v39 = vadd.f32 %v3703_v58, %v680_v35  ;;  %v709_v47 = vmax.f32 %v689_v41, 0.0 }
 0x252   :  { %v4197_v38 = vpop.f32.mrf.mxu1 }
 0x253   :  { %v692_v40 = vadd.f32 %v4197_v38, %v3703_v58  ;;  %4222 = vmatprep.mubr.bf16.mxu0 %v715_v36  ;;  %v707_v45 = vmax.f32 %v681_v39, 0.0 }
 0x254   :  { %v683_v42 = vpop.f32.mrf.mxu1  ;;  %4223 = vmatmul.mubr.bf16.gmra.mxu0 %v716_v37 }
 0x255   :  { %v684_v43 = vadd.f32 %v3703_v58, %v683_v42  ;;  %v710_v44 = vmax.f32 %v692_v40, 0.0 }
 0x257   :  { %v708_v46 = vmax.f32 %v684_v43, 0.0  ;;  %v718_v49 = vpack.c.bf16 %v710_v44, %v709_v47 }
 0x259   :  { %v717_v48 = vpack.c.bf16 %v708_v46, %v707_v45 }
 0x25b   :  { %4226 = vmatprep.mubr.bf16.mxu0 %v717_v48 }
 0x25c   :  { %4227 = vmatmul.mubr.bf16.gmra.mxu0 %v718_v49 }
 0x25d   :  { %4266 = vmatprep.mubr.bf16.mxu0 %v5248_v4 }
 0x304   :  { %v4216_v52 = vpop.f32.mrf.mxu0 }
 0x305   :  { %v816_v53 = vadd.f32 %v4216_v52, %v5259_v51 }
 0x306   :  { %v807_v54 = vpop.f32.mrf.mxu0 }
 0x307   :  { %v808_v55 = vadd.f32 %v5259_v51, %v807_v54  ;;  %v5263_v57 = vmax.f32 %v816_v53, 0.0 }
 0x308   :  { %v4217_v56 = vpop.f32.mrf.mxu0 }
 0x309   :  { %v819_v58 = vadd.f32 %v4217_v56, %v5259_v51  ;;  %v5266_v59 = vmax.f32 %v808_v55, 0.0  ;;  %v888_v63 = vmul.f32 0.0, %v5263_v57 }
 0x30a   :  { %v810_v4 = vpop.f32.mrf.mxu0 }
 0x30b   :  { %v5268_v60 = vmax.f32 %v819_v58, 0.0  ;;  %v811_v61 = vadd.f32 %v5259_v51, %v810_v4  ;;  %v924_v2 = vmul.f32 %v5266_v59, %v5266_v59  ;;  %v926_v10 = vmul.f32 %v888_v63, %v5263_v57 }
 0x30c   :  { %v4220_v62 = vpop.f32.mrf.mxu0 }
 0x30d   :  { %v5272_v0 = vmax.f32 %v811_v61, 0.0  ;;  %v889_v3 = vmul.f32 0.0, %v5268_v60  ;;  %v832_v7 = vadd.f32 %v4220_v62, %v5259_v51 }
 0x30e   :  { %v823_v1 = vpop.f32.mrf.mxu0 }
 0x30f   :  { %v902_v5 = vadd.f32 %v5272_v0, %v5266_v59  ;;  %v925_v6 = vmul.f32 %v5272_v0, %v5272_v0  ;;  %v824_v8 = vadd.f32 %v5259_v51, %v823_v1  ;;  %v927_v16 = vmul.f32 %v889_v3, %v5268_v60 }
 0x310   :  { %v4221_v9 = vpop.f32.mrf.mxu0  ;;  %v5290_v18 = vmax.f32 %v832_v7, 0.0 }
 0x311   :  { %v903_v11 = vadd.f32 %v902_v5, %v888_v63  ;;  %v940_v12 = vadd.f32 %v925_v6, %v924_v2  ;;  %v835_v13 = vadd.f32 %v4221_v9, %v5259_v51  ;;  %v5287_v14 = vmax.f32 %v824_v8, 0.0 }
 0x312   :  { %v826_v15 = vpop.f32.mrf.mxu0  ;;  %v892_v30 = vmul.f32 0.0, %v5290_v18 }
 0x313   :  { %v941_v17 = vadd.f32 %v940_v12, %v926_v10  ;;  %v890_v19 = vmul.f32 0.0, %v5287_v14  ;;  %v904_v20 = vadd.f32 %v903_v11, %v889_v3  ;;  %v827_v21 = vadd.f32 %v5259_v51, %v826_v15 }
 0x314   :  { %v4224_v22 = vpop.f32.mrf.mxu0  ;;  %v5294_v23 = vmax.f32 %v835_v13, 0.0  ;;  %v930_v43 = vmul.f32 %v892_v30, %v5290_v18 }
 0x315   :  { %v928_v24 = vmul.f32 %v890_v19, %v5287_v14  ;;  %v942_v25 = vadd.f32 %v941_v17, %v927_v16  ;;  %v5297_v26 = vmax.f32 %v827_v21, 0.0  ;;  %v848_v28 = vadd.f32 %v4224_v22, %v5259_v51 }
 0x316   :  { %v839_v27 = vpop.f32.mrf.mxu0  ;;  %v905_v31 = vadd.f32 %v904_v20, %v890_v19  ;;  %v893_v34 = vmul.f32 0.0, %v5294_v23 }
 0x317   :  { %v840_v29 = vadd.f32 %v5259_v51, %v839_v27  ;;  %v891_v32 = vmul.f32 0.0, %v5297_v26  ;;  %v943_v36 = vadd.f32 %v942_v25, %v928_v24  ;;  %v5308_v41 = vmax.f32 %v848_v28, 0.0 }
 0x318   :  { %v4225_v33 = vpop.f32.mrf.mxu0  ;;  %v931_v49 = vmul.f32 %v893_v34, %v5294_v23 }
 0x319   :  { %v5304_v35 = vmax.f32 %v840_v29, 0.0  ;;  %v906_v37 = vadd.f32 %v905_v31, %v891_v32  ;;  %v929_v38 = vmul.f32 %v891_v32, %v5297_v26  ;;  %v851_v39 = vadd.f32 %v4225_v33, %v5259_v51 }
 0x31a   :  { %v842_v40 = vpop.f32.mrf.mxu0  ;;  %v896_v56 = vmul.f32 0.0, %v5308_v41 }
 0x31b   :  { %v843_v42 = vadd.f32 %v5259_v51, %v842_v40  ;;  %v907_v44 = vadd.f32 %v906_v37, %v892_v30  ;;  %v944_v45 = vadd.f32 %v943_v36, %v929_v38  ;;  %v894_v46 = vmul.f32 0.0, %v5304_v35 }
 0x31c   :  { %v4228_v47 = vpop.f32.mrf.mxu0  ;;  %v5316_v54 = vmax.f32 %v851_v39, 0.0  ;;  %v934_v11 = vmul.f32 %v896_v56, %v5308_v41 }
 0x31d   :  { %v5313_v48 = vmax.f32 %v843_v42, 0.0  ;;  %v945_v52 = vadd.f32 %v944_v45, %v930_v43  ;;  %v908_v53 = vadd.f32 %v907_v44, %v893_v34  ;;  %v932_v62 = vmul.f32 %v894_v46, %v5304_v35 }
 0x31e   :  { %v855_v55 = vpop.f32.mrf.mxu0  ;;  %v864_v1 = vadd.f32 %v4228_v47, %v5259_v51  ;;  %v897_v7 = vmul.f32 0.0, %v5316_v54 }
 0x31f   :  { %v895_v58 = vmul.f32 0.0, %v5313_v48  ;;  %v856_v4 = vadd.f32 %v5259_v51, %v855_v55  ;;  %v909_v61 = vadd.f32 %v908_v53, %v894_v46  ;;  %v946_v63 = vadd.f32 %v945_v52, %v931_v49 }
 0x320   :  { %v4229_v2 = vpop.f32.mrf.mxu0  ;;  %v884_v16 = vmax.f32 %v864_v1, 0.0  ;;  %v935_v20 = vmul.f32 %v897_v7, %v5316_v54 }
 0x321   :  { %v933_v3 = vmul.f32 %v895_v58, %v5313_v48  ;;  %v5324_v5 = vmax.f32 %v856_v4, 0.0  ;;  %v947_v6 = vadd.f32 %v946_v63, %v932_v62  ;;  %v910_v8 = vadd.f32 %v909_v61, %v895_v58 }
 0x322   :  { %v867_v9 = vadd.f32 %v4229_v2, %v5259_v51  ;;  %v858_v10 = vpop.f32.mrf.mxu0  ;;  %v900_v27 = vmul.f32 0.0, %v884_v16 }
 0x323   :  { %v859_v12 = vadd.f32 %v5259_v51, %v858_v10  ;;  %v911_v13 = vadd.f32 %v910_v8, %v896_v56  ;;  %v948_v15 = vadd.f32 %v947_v6, %v933_v3  ;;  %v898_v17 = vmul.f32 0.0, %v5324_v5 }
 0x324   :  { %v885_v24 = vmax.f32 %v867_v9, 0.0  ;;  %v938_v34 = vmul.f32 %v900_v27, %v884_v16 }
 0x325   :  { %v883_v19 = vmax.f32 %v859_v12, 0.0  ;;  %v949_v21 = vadd.f32 %v948_v15, %v934_v11  ;;  %v912_v22 = vadd.f32 %v911_v13, %v897_v7  ;;  %v936_v29 = vmul.f32 %v898_v17, %v5324_v5 }
 0x326   :  { %v901_v51 = vmul.f32 0.0, %v885_v24 }
 0x327   :  { %v899_v25 = vmul.f32 0.0, %v883_v19  ;;  %v913_v28 = vadd.f32 %v912_v22, %v898_v17  ;;  %v950_v30 = vadd.f32 %v949_v21, %v935_v20 }
 0x328   :  { %v939_v38 = vmul.f32 %v901_v51, %v885_v24 }
 0x329   :  { %v937_v31 = vmul.f32 %v899_v25, %v883_v19  ;;  %v951_v32 = vadd.f32 %v950_v30, %v936_v29  ;;  %v914_v33 = vadd.f32 %v913_v28, %v899_v25 }
 0x32b   :  { %v915_v36 = vadd.f32 %v914_v33, %v900_v27  ;;  %v952_v37 = vadd.f32 %v951_v32, %v937_v31 }
 0x32d   :  { %v916_v39 = vadd.f32 %v915_v36, %v901_v51  ;;  %v953_v40 = vadd.f32 %v952_v37, %v938_v34 }
 0x32f   :  { %v917_v42 = vrot.slane %v916_v39, 4  ;;  %v954_v43 = vadd.f32 %v953_v40, %v939_v38  ;;  %v4574_v40 = vld [vmem:[#allocation12 + $0x30] sm:$0xff]  }
 0x331   :  { %v918_v44 = vadd.f32 %v917_v42, %v916_v39  ;;  %v955_v45 = vrot.slane %v954_v43, 4  ;;  %v5356_v42 = vld [vmem:[#allocation3 + $0x8] sm:$0xff]  }
 0x333   :  { %v919_v46 = vrot.slane %v918_v44, 2  ;;  %v956_v47 = vadd.f32 %v955_v45, %v954_v43  ;;  %v5359_v43 = vld [vmem:[#allocation3 + $0x10] sm:$0xff]   ;;  %v4576_v45 = vld [vmem:[#allocation12 + $0x20] sm:$0xff]  }
 0x335   :  { %v920_v49 = vadd.f32 %v919_v46, %v918_v44  ;;  %v957_v52 = vrot.slane %v956_v47, 2  ;;  %v4575_v44 = vld [vmem:[#allocation12 + $0x28] sm:$0xff]   ;;  %v5362_v46 = vld [vmem:[#allocation3 + $0x18] sm:$0xff]  }
 0x337   :  { %v921_v53 = vrot.slane %v920_v49, 1  ;;  %v958_v55 = vadd.f32 %v957_v52, %v956_v47  ;;  %v5365_v47 = vld [vmem:[#allocation3 + $0x20] sm:$0xff]   ;;  %v4578_v52 = vld [vmem:[#allocation12 + $0x10] sm:$0xff]  }
 0x339   :  { %v922_v56 = vadd.f32 %v921_v53, %v920_v49  ;;  %v959_v58 = vrot.slane %v958_v55, 1  ;;  %v4577_v49 = vld [vmem:[#allocation12 + $0x18] sm:$0xff]   ;;  %v5368_v53 = vld [vmem:[#allocation3 + $0x28] sm:$0xff]  }
 0x33b   :  { %v923_v4 = vmul.f32 0.0625, %v922_v56  ;;  %v960_v61 = vadd.f32 %v959_v58, %v958_v55  ;;  %v5371_v55 = vld [vmem:[#allocation3 + $0x30] sm:$0xff]   ;;  %v5374_v56 = vld [vmem:[#allocation3 + $0x38] sm:$0xff]  }
 0x33c   :  { %v4579_v58 = vld [vmem:[#allocation12 + $0x8] sm:$0xff]  }
 0x33d   :  { %v961_v62 = vmul.f32 0.0625, %v960_v61  ;;  %v962_v63 = vmul.f32 %v923_v4, %v923_v4  ;;  %v978_v6 = vsub.f32 %v883_v19, %v923_v4  ;;  %v979_v7 = vsub.f32 %v884_v16, %v923_v4  ;;  %v4581_v61 = vld [vmem:[#allocation14 + $0x38] sm:$0xff]  }
 0x33e   :  { %v980_v8 = vsub.f32 %v885_v24, %v923_v4  ;;  %v977_v9 = vsub.f32 %v5324_v5, %v923_v4  ;;  %v975_v10 = vsub.f32 %v5308_v41, %v923_v4  ;;  %v976_v11 = vsub.f32 %v5316_v54, %v923_v4 }
 0x33f   :  { %v963_v1 = vsub.f32 %v961_v62, %v962_v63  ;;  %v971_v13 = vsub.f32 %v5290_v18, %v923_v4  ;;  %v972_v15 = vsub.f32 %v5294_v23, %v923_v4  ;;  %v969_v17 = vsub.f32 %v5287_v14, %v923_v4  ;;  %v4582_v62 = vld [vmem:[#allocation14 + $0x30] sm:$0xff]   ;;  %v4583_v63 = vld [vmem:[#allocation14 + $0x28] sm:$0xff]  }
 0x340   :  { %v970_v20 = vsub.f32 %v5297_v26, %v923_v4  ;;  %v967_v24 = vsub.f32 %v5263_v57, %v923_v4  ;;  %v968_v5 = vsub.f32 %v5268_v60, %v923_v4  ;;  %v965_v41 = vsub.f32 %v5266_v59, %v923_v4 }
 0x341   :  { %v964_v2 = vmax.f32 %v963_v1, 0.0  ;;  %v966_v54 = vsub.f32 %v5272_v0, %v923_v4  ;;  %v973_v0 = vsub.f32 %v5304_v35, %v923_v4  ;;  %v974_v51 = vsub.f32 %v5313_v48, %v923_v4  ;;  %v4573_v35 = vld [vmem:[#allocation12 + $0x38] sm:$0xff]   ;;  %v4580_v4 = vld [vmem:[#allocation12] sm:$0xff]  }
 0x342   :  { %v5353_v48 = vld [vmem:[#allocation8] sm:$0xf]  ;;  %v4584_v1 = vld [vmem:[#allocation14 + $0x20] sm:$0xff]  }
 0x343   :  { %v981_v3 = vadd.f32 1e-05, %v964_v2  ;;  %v4585_v2 = vld [vmem:[#allocation14 + $0x18] sm:$0xff]  }
 0x345   :  { %4797 = vrsqrt.f32 %v981_v3 }
 0x352   :  { %v4798_v12 = vpop.eup %4797 }
 0x353   :  { %v997_v21 = vmul.f32 %v4798_v12, %v979_v7  ;;  %v998_v22 = vmul.f32 %v4798_v12, %v980_v8  ;;  %v995_v19 = vmul.f32 %v4798_v12, %v977_v9  ;;  %v996_v16 = vmul.f32 %v4798_v12, %v978_v6 }
 0x354   :  { %v993_v18 = vmul.f32 %v4798_v12, %v975_v10  ;;  %v989_v27 = vmul.f32 %v4798_v12, %v971_v13  ;;  %v990_v23 = vmul.f32 %v4798_v12, %v972_v15  ;;  %v994_v14 = vmul.f32 %v4798_v12, %v976_v11 }
 0x355   :  { %v1006_v25 = vpack.c.bf16 %v998_v22, %v997_v21  ;;  %v1005_v28 = vpack.c.bf16 %v996_v16, %v995_v19  ;;  %v987_v29 = vmul.f32 %v4798_v12, %v969_v17  ;;  %v988_v26 = vmul.f32 %v4798_v12, %v970_v20 }
 0x356   :  { %v1002_v30 = vpack.c.bf16 %v990_v23, %v989_v27  ;;  %v985_v31 = vmul.f32 %v4798_v12, %v967_v24  ;;  %v986_v32 = vmul.f32 %v4798_v12, %v968_v5  ;;  %v983_v59 = vmul.f32 %v4798_v12, %v965_v41 }
 0x357   :  { %4231 = vmatpush3.bf16.msra.mxu1 %v1006_v25  ;;  %4250 = vmatprep.subr.bf16.mxu0 %v1006_v25  ;;  %v1001_v57 = vpack.c.bf16 %v988_v26, %v987_v29  ;;  %v984_v60 = vmul.f32 %v4798_v12, %v966_v54  ;;  %v1004_v36 = vpack.c.bf16 %v994_v14, %v993_v18 }
 0x358   :  { %4251 = vmatpush3.bf16.msra.mxu0 %v1006_v25  ;;  %4232 = vmatprep.subr.bf16.mxu1 %v5081_v50  ;;  %v1000_v33 = vpack.c.bf16 %v986_v32, %v985_v31  ;;  %v991_v37 = vmul.f32 %v4798_v12, %v973_v0  ;;  %v992_v38 = vmul.f32 %v4798_v12, %v974_v51  ;;  %v4587_v31 = vld [vmem:[#allocation14 + $0x8] sm:$0xff]   ;;  %v4588_v32 = vld [vmem:[#allocation14] sm:$0xff]  }
 0x359   :  { %4252 = vmatprep.subr.bf16.mxu0 %v1005_v28  ;;  %v999_v34 = vpack.c.bf16 %v984_v60, %v983_v59  ;;  %v3721_v60 = vld [vmem:[%s5685_s8] ss:$0 sm:$0xff] }
 0x35a   :  { %v1003_v39 = vpack.c.bf16 %v992_v38, %v991_v37 }
 0x35b   :  { %4233 = vmatpush3.bf16.msra.mxu1 %v1005_v28 }
 0x35c   :  { %4253 = vmatpush3.bf16.msra.mxu0 %v1005_v28  ;;  %4234 = vmatprep.subr.bf16.mxu1 %v5081_v50 }
 0x35d   :  { %4254 = vmatprep.subr.bf16.mxu0 %v1004_v36 }
 0x35f   :  { %4235 = vmatpush3.bf16.msra.mxu1 %v1004_v36 }
 0x360   :  { %4255 = vmatpush3.bf16.msra.mxu0 %v1004_v36  ;;  %4236 = vmatprep.subr.bf16.mxu1 %v5081_v50 }
 0x361   :  { %4256 = vmatprep.subr.bf16.mxu0 %v1003_v39 }
 0x363   :  { %4237 = vmatpush3.bf16.msra.mxu1 %v1003_v39 }
 0x364   :  { %4257 = vmatpush3.bf16.msra.mxu0 %v1003_v39  ;;  %4238 = vmatprep.subr.bf16.mxu1 %v5081_v50 }
 0x365   :  { %4258 = vmatprep.subr.bf16.mxu0 %v1002_v30 }
 0x367   :  { %4239 = vmatpush3.bf16.msra.mxu1 %v1002_v30 }
 0x368   :  { %4259 = vmatpush3.bf16.msra.mxu0 %v1002_v30  ;;  %4240 = vmatprep.subr.bf16.mxu1 %v5081_v50  ;;  %v4586_v30 = vld [vmem:[#allocation14 + $0x10] sm:$0xff]  }
 0x369   :  { %4260 = vmatprep.subr.bf16.mxu0 %v1001_v57 }
 0x36b   :  { %4241 = vmatpush3.bf16.msra.mxu1 %v1001_v57 }
 0x36c   :  { %4261 = vmatpush3.bf16.msra.mxu0 %v1001_v57  ;;  %4242 = vmatprep.subr.bf16.mxu1 %v5081_v50 }
 0x36d   :  { %4262 = vmatprep.subr.bf16.mxu0 %v1000_v33 }
 0x36f   :  { %4243 = vmatpush3.bf16.msra.mxu1 %v1000_v33 }
 0x370   :  { %4263 = vmatpush3.bf16.msra.mxu0 %v1000_v33  ;;  %4244 = vmatprep.subr.bf16.mxu1 %v5081_v50 }
 0x371   :  { %4264 = vmatprep.subr.bf16.mxu0 %v999_v34 }
 0x373   :  { %4245 = vmatpush3.bf16.msra.mxu1 %v999_v34 }
 0x374   :  { %4265 = vmatpush3.bf16.msra.mxu0 %v999_v34  ;;  %4282 = vmatprep.subr.bf16.mxu1 %v4573_v35 }
 0x375   :  { %4314 = vmatprep.subr.bf16.mxu0 %v4581_v61 }
 0x376   :  { %4247 = vmatmul.mubr.bf16.vlgmr.msra.gmra.mxu1 %v5353_v48 }
 0x377   :  { %4267 = vmatmul.mubr.bf16.vlgmr.msra.gmra.mxu0 %v5356_v42  ;;  %4283 = vmatpush3.bf16.msra.mxu1 %v4573_v35 }
 0x378   :  { %4270 = vmatprep.mubr.bf16.mxu0 %v5359_v43  ;;  %4284 = vmatprep.subr.bf16.mxu1 %v4574_v40 }
 0x379   :  { %4315 = vmatpush3.bf16.msra.mxu0 %v4581_v61 }
 0x37a   :  { %4316 = vmatprep.subr.bf16.mxu0 %v4582_v62 }
 0x37b   :  { %4285 = vmatpush3.bf16.msra.mxu1 %v4574_v40 }
 0x37c   :  { %4286 = vmatprep.subr.bf16.mxu1 %v4575_v44 }
 0x37d   :  { %4317 = vmatpush3.bf16.msra.mxu0 %v4582_v62 }
 0x37e   :  { %4318 = vmatprep.subr.bf16.mxu0 %v4583_v63 }
 0x37f   :  { %4271 = vmatmul.mubr.bf16.gmra.mxu0 %v5362_v46  ;;  %4287 = vmatpush3.bf16.msra.mxu1 %v4575_v44 }
 0x380   :  { %4274 = vmatprep.mubr.bf16.mxu0 %v5365_v47  ;;  %4288 = vmatprep.subr.bf16.mxu1 %v4576_v45 }
 0x381   :  { %4319 = vmatpush3.bf16.msra.mxu0 %v4583_v63 }
 0x382   :  { %4320 = vmatprep.subr.bf16.mxu0 %v4584_v1 }
 0x383   :  { %4289 = vmatpush3.bf16.msra.mxu1 %v4576_v45 }
 0x384   :  { %4290 = vmatprep.subr.bf16.mxu1 %v4577_v49 }
 0x385   :  { %4321 = vmatpush3.bf16.msra.mxu0 %v4584_v1 }
 0x386   :  { %4322 = vmatprep.subr.bf16.mxu0 %v4585_v2 }
 0x387   :  { %4275 = vmatmul.mubr.bf16.gmra.mxu0 %v5368_v53  ;;  %4291 = vmatpush3.bf16.msra.mxu1 %v4577_v49 }
 0x388   :  { %4278 = vmatprep.mubr.bf16.mxu0 %v5371_v55  ;;  %4292 = vmatprep.subr.bf16.mxu1 %v4578_v52 }
 0x389   :  { %4323 = vmatpush3.bf16.msra.mxu0 %v4585_v2 }
 0x38a   :  { %4324 = vmatprep.subr.bf16.mxu0 %v4586_v30 }
 0x38b   :  { %4293 = vmatpush3.bf16.msra.mxu1 %v4578_v52 }
 0x38c   :  { %4294 = vmatprep.subr.bf16.mxu1 %v4579_v58 }
 0x38d   :  { %4325 = vmatpush3.bf16.msra.mxu0 %v4586_v30 }
 0x38e   :  { %4326 = vmatprep.subr.bf16.mxu0 %v4587_v31 }
 0x38f   :  { %4279 = vmatmul.mubr.bf16.gmra.mxu0 %v5374_v56  ;;  %4295 = vmatpush3.bf16.msra.mxu1 %v4579_v58 }
 0x390   :  { %4296 = vmatprep.subr.bf16.mxu1 %v4580_v4 }
 0x391   :  { %4327 = vmatpush3.bf16.msra.mxu0 %v4587_v31 }
 0x392   :  { %4328 = vmatprep.subr.bf16.mxu0 %v4588_v32 }
 0x393   :  { %4297 = vmatpush3.bf16.msra.mxu1 %v4580_v4 }
 0x394   :  { %4346 = vmatprep.subr.bf16.mxu1 %v5081_v50 }
 0x395   :  { %4329 = vmatpush3.bf16.msra.mxu0 %v4588_v32 }
 0x436   :  { %v5378_v3 = vpop.f32.mrf.mxu1 }
 0x437   :  { %v4268_v6 = vpop.f32.mrf.mxu0 }
 0x438   :  { %v4248_v7 = vpop.f32.mrf.mxu1 }
 0x439   :  { %v1116_v8 = vpop.f32.mrf.mxu0 }
 0x43a   :  { %v1044_v9 = vpop.f32.mrf.mxu1 }
 0x43b   :  { %v4269_v10 = vpop.f32.mrf.mxu0 }
 0x43c   :  { %v4249_v11 = vpop.f32.mrf.mxu1  ;;  %v1180_v15 = vpack.c.bf16 %v4269_v10, %v4268_v6 }
 0x43d   :  { %v1119_v12 = vpop.f32.mrf.mxu0 }
 0x43e   :  { %v1179_v13 = vpack.c.bf16 %v1119_v12, %v1116_v8 }
 0x43f   :  { %v4272_v17 = vpop.f32.mrf.mxu0 }
 0x440   :  { %4298 = vmatprep.mubr.bf16.mxu1 %v1179_v13 }
 0x441   :  { %v1132_v20 = vpop.f32.mrf.mxu0  ;;  %4299 = vmatmul.mubr.bf16.vlgmr.msra.gmra.mxu1 %v1180_v15 }
 0x443   :  { %v4273_v21 = vpop.f32.mrf.mxu0 }
 0x444   :  { %v1182_v16 = vpack.c.bf16 %v4273_v21, %v4272_v17 }
 0x445   :  { %v1135_v22 = vpop.f32.mrf.mxu0 }
 0x446   :  { %v1181_v19 = vpack.c.bf16 %v1135_v22, %v1132_v20 }
 0x447   :  { %v4276_v24 = vpop.f32.mrf.mxu0 }
 0x448   :  { %4302 = vmatprep.mubr.bf16.mxu1 %v1181_v19 }
 0x449   :  { %v1148_v5 = vpop.f32.mrf.mxu0  ;;  %4303 = vmatmul.mubr.bf16.gmra.mxu1 %v1182_v16 }
 0x44b   :  { %v4277_v41 = vpop.f32.mrf.mxu0 }
 0x44c   :  { %v1184_v18 = vpack.c.bf16 %v4277_v41, %v4276_v24 }
 0x44d   :  { %v1151_v54 = vpop.f32.mrf.mxu0 }
 0x44e   :  { %v1183_v25 = vpack.c.bf16 %v1151_v54, %v1148_v5 }
 0x44f   :  { %v4280_v27 = vpop.f32.mrf.mxu0 }
 0x450   :  { %4306 = vmatprep.mubr.bf16.mxu1 %v1183_v25 }
 0x451   :  { %v1164_v23 = vpop.f32.mrf.mxu0  ;;  %4307 = vmatmul.mubr.bf16.gmra.mxu1 %v1184_v18 }
 0x453   :  { %v4281_v28 = vpop.f32.mrf.mxu0 }
 0x454   :  { %v1186_v26 = vpack.c.bf16 %v4281_v28, %v4280_v27 }
 0x455   :  { %v1167_v14 = vpop.f32.mrf.mxu0 }
 0x456   :  { %v1185_v29 = vpack.c.bf16 %v1167_v14, %v1164_v23 }
 0x458   :  { %4310 = vmatprep.mubr.bf16.mxu1 %v1185_v29 }
 0x459   :  { %4311 = vmatmul.mubr.bf16.gmra.mxu1 %v1186_v26 }
 0x45a   :  { %4362 = vmatprep.mubr.msk.bf16.mxu1 %vm5082_vm0, %v5081_v50 }
 0x501   :  { %v4300_v57 = vpop.f32.mrf.mxu1 }
 0x502   :  { %v1284_v34 = vadd.f32 %v4300_v57, %v3721_v60 }
 0x503   :  { %v1275_v59 = vpop.f32.mrf.mxu1 }
 0x504   :  { %v1276_v51 = vadd.f32 %v3721_v60, %v1275_v59  ;;  %v1340_v44 = vmax.f32 %v1284_v34, 0.0 }
 0x505   :  { %v4301_v0 = vpop.f32.mrf.mxu1 }
 0x506   :  { %v1287_v33 = vadd.f32 %v4301_v0, %v3721_v60  ;;  %v1338_v35 = vmax.f32 %v1276_v51, 0.0  ;;  %v4810_v51 = vld [vmem:[#allocation3] sm:$0xff]  }
 0x507   :  { %v1278_v36 = vpop.f32.mrf.mxu1 }
 0x508   :  { %v1279_v37 = vadd.f32 %v3721_v60, %v1278_v36  ;;  %v1341_v38 = vmax.f32 %v1287_v33, 0.0  ;;  %v5388_v33 = vld [vmem:[%s5687_s10] ss:$0 sm:$0xff] }
 0x509   :  { %v4304_v39 = vpop.f32.mrf.mxu1 }
 0x50a   :  { %v1339_v40 = vmax.f32 %v1279_v37, 0.0  ;;  %v1355_v52 = vpack.c.bf16 %v1341_v38, %v1340_v44  ;;  %v1300_v62 = vadd.f32 %v4304_v39, %v3721_v60 }
 0x50b   :  { %v1291_v45 = vpop.f32.mrf.mxu1 }
 0x50c   :  { %v1354_v49 = vpack.c.bf16 %v1339_v40, %v1338_v35  ;;  %v1292_v4 = vadd.f32 %v3721_v60, %v1291_v45  ;;  %v1344_v9 = vmax.f32 %v1300_v62, 0.0 }
 0x50d   :  { %v4305_v58 = vpop.f32.mrf.mxu1 }
 0x50e   :  { %v1303_v61 = vadd.f32 %v4305_v58, %v3721_v60  ;;  %4330 = vmatprep.mubr.bf16.mxu0 %v1354_v49  ;;  %v1342_v7 = vmax.f32 %v1292_v4, 0.0 }
 0x50f   :  { %v1294_v63 = vpop.f32.mrf.mxu1  ;;  %4331 = vmatmul.mubr.bf16.vlgmr.msra.gmra.mxu0 %v1355_v52 }
 0x510   :  { %v1295_v1 = vadd.f32 %v3721_v60, %v1294_v63  ;;  %v1345_v2 = vmax.f32 %v1303_v61, 0.0 }
 0x511   :  { %v4308_v6 = vpop.f32.mrf.mxu1 }
 0x512   :  { %v1343_v8 = vmax.f32 %v1295_v1, 0.0  ;;  %v1357_v12 = vpack.c.bf16 %v1345_v2, %v1344_v9  ;;  %v1316_v20 = vadd.f32 %v4308_v6, %v3721_v60 }
 0x513   :  { %v1307_v10 = vpop.f32.mrf.mxu1 }
 0x514   :  { %v1356_v11 = vpack.c.bf16 %v1343_v8, %v1342_v7  ;;  %v1308_v15 = vadd.f32 %v3721_v60, %v1307_v10  ;;  %v1348_v41 = vmax.f32 %v1316_v20, 0.0 }
 0x515   :  { %v4309_v13 = vpop.f32.mrf.mxu1 }
 0x516   :  { %v1319_v17 = vadd.f32 %v4309_v13, %v3721_v60  ;;  %4334 = vmatprep.mubr.bf16.mxu0 %v1356_v11  ;;  %v1346_v24 = vmax.f32 %v1308_v15, 0.0 }
 0x517   :  { %v1310_v21 = vpop.f32.mrf.mxu1  ;;  %4335 = vmatmul.mubr.bf16.gmra.mxu0 %v1357_v12 }
 0x518   :  { %v1311_v22 = vadd.f32 %v3721_v60, %v1310_v21  ;;  %v1349_v19 = vmax.f32 %v1319_v17, 0.0 }
 0x519   :  { %v4312_v16 = vpop.f32.mrf.mxu1 }
 0x51a   :  { %v1347_v5 = vmax.f32 %v1311_v22, 0.0  ;;  %v1359_v18 = vpack.c.bf16 %v1349_v19, %v1348_v41  ;;  %v1332_v14 = vadd.f32 %v4312_v16, %v3721_v60 }
 0x51b   :  { %v1323_v54 = vpop.f32.mrf.mxu1 }
 0x51c   :  { %v1358_v25 = vpack.c.bf16 %v1347_v5, %v1346_v24  ;;  %v1324_v23 = vadd.f32 %v3721_v60, %v1323_v54  ;;  %v1352_v57 = vmax.f32 %v1332_v14, 0.0 }
 0x51d   :  { %v4313_v27 = vpop.f32.mrf.mxu1 }
 0x51e   :  { %v1335_v28 = vadd.f32 %v4313_v27, %v3721_v60  ;;  %4338 = vmatprep.mubr.bf16.mxu0 %v1358_v25  ;;  %v1350_v31 = vmax.f32 %v1324_v23, 0.0 }
 0x51f   :  { %v1326_v29 = vpop.f32.mrf.mxu1  ;;  %4339 = vmatmul.mubr.bf16.gmra.mxu0 %v1359_v18 }
 0x520   :  { %v1327_v26 = vadd.f32 %v3721_v60, %v1326_v29  ;;  %v1353_v30 = vmax.f32 %v1335_v28, 0.0 }
 0x522   :  { %v1351_v32 = vmax.f32 %v1327_v26, 0.0  ;;  %v1361_v0 = vpack.c.bf16 %v1353_v30, %v1352_v57 }
 0x524   :  { %v1360_v59 = vpack.c.bf16 %v1351_v32, %v1350_v31 }
 0x526   :  { %4342 = vmatprep.mubr.bf16.mxu0 %v1360_v59 }
 0x527   :  { %4343 = vmatmul.mubr.bf16.gmra.mxu0 %v1361_v0 }
 0x528   :  { %4382 = vmatprep.mubr.bf16.mxu0 %v4810_v51 }
 0x5cf   :  { %v4332_v34 = vpop.f32.mrf.mxu0 }
 0x5d0   :  { %v1459_v36 = vadd.f32 %v4332_v34, %v5388_v33 }
 0x5d1   :  { %v1450_v37 = vpop.f32.mrf.mxu0 }
 0x5d2   :  { %v1451_v60 = vadd.f32 %v5388_v33, %v1450_v37  ;;  %v5392_v39 = vmax.f32 %v1459_v36, 0.0 }
 0x5d3   :  { %v4333_v38 = vpop.f32.mrf.mxu0 }
 0x5d4   :  { %v1462_v35 = vadd.f32 %v4333_v38, %v5388_v33  ;;  %v5395_v44 = vmax.f32 %v1451_v60, 0.0  ;;  %v1531_v58 = vmul.f32 0.0, %v5392_v39 }
 0x5d5   :  { %v1453_v40 = vpop.f32.mrf.mxu0 }
 0x5d6   :  { %v5397_v45 = vmax.f32 %v1462_v35, 0.0  ;;  %v1454_v49 = vadd.f32 %v5388_v33, %v1453_v40  ;;  %v1567_v62 = vmul.f32 %v5395_v44, %v5395_v44  ;;  %v1569_v9 = vmul.f32 %v1531_v58, %v5392_v39 }
 0x5d7   :  { %v4336_v52 = vpop.f32.mrf.mxu0 }
 0x5d8   :  { %v5401_v4 = vmax.f32 %v1454_v49, 0.0  ;;  %v1532_v63 = vmul.f32 0.0, %v5397_v45  ;;  %v1475_v6 = vadd.f32 %v4336_v52, %v5388_v33 }
 0x5d9   :  { %v1466_v61 = vpop.f32.mrf.mxu0 }
 0x5da   :  { %v1545_v1 = vadd.f32 %v5401_v4, %v5395_v44  ;;  %v1568_v2 = vmul.f32 %v5401_v4, %v5401_v4  ;;  %v1467_v7 = vadd.f32 %v5388_v33, %v1466_v61  ;;  %v1570_v17 = vmul.f32 %v1532_v63, %v5397_v45 }
 0x5db   :  { %v4337_v8 = vpop.f32.mrf.mxu0  ;;  %v5417_v21 = vmax.f32 %v1475_v6, 0.0 }
 0x5dc   :  { %v1546_v10 = vadd.f32 %v1545_v1, %v1531_v58  ;;  %v1583_v11 = vadd.f32 %v1568_v2, %v1567_v62  ;;  %v1478_v12 = vadd.f32 %v4337_v8, %v5388_v33  ;;  %v5414_v13 = vmax.f32 %v1467_v7, 0.0 }
 0x5dd   :  { %v1469_v15 = vpop.f32.mrf.mxu0  ;;  %v1535_v28 = vmul.f32 0.0, %v5417_v21 }
 0x5de   :  { %v1584_v20 = vadd.f32 %v1583_v11, %v1569_v9  ;;  %v1533_v22 = vmul.f32 0.0, %v5414_v13  ;;  %v1547_v19 = vadd.f32 %v1546_v10, %v1532_v63  ;;  %v1470_v16 = vadd.f32 %v5388_v33, %v1469_v15 }
 0x5df   :  { %v4340_v24 = vpop.f32.mrf.mxu0  ;;  %v5421_v5 = vmax.f32 %v1478_v12, 0.0  ;;  %v1573_v37 = vmul.f32 %v1535_v28, %v5417_v21 }
 0x5e0   :  { %v1571_v41 = vmul.f32 %v1533_v22, %v5414_v13  ;;  %v1585_v54 = vadd.f32 %v1584_v20, %v1570_v17  ;;  %v5424_v25 = vmax.f32 %v1470_v16, 0.0  ;;  %v1491_v27 = vadd.f32 %v4340_v24, %v5388_v33 }
 0x5e1   :  { %v1482_v18 = vpop.f32.mrf.mxu0  ;;  %v1548_v14 = vadd.f32 %v1547_v19, %v1533_v22  ;;  %v1536_v30 = vmul.f32 0.0, %v5421_v5 }
 0x5e2   :  { %v1483_v23 = vadd.f32 %v5388_v33, %v1482_v18  ;;  %v1534_v29 = vmul.f32 0.0, %v5424_v25  ;;  %v1586_v32 = vadd.f32 %v1585_v54, %v1571_v41  ;;  %v5435_v34 = vmax.f32 %v1491_v27, 0.0 }
 0x5e3   :  { %v4341_v26 = vpop.f32.mrf.mxu0  ;;  %v1574_v52 = vmul.f32 %v1536_v30, %v5421_v5 }
 0x5e4   :  { %v5431_v31 = vmax.f32 %v1483_v23, 0.0  ;;  %v1549_v57 = vadd.f32 %v1548_v14, %v1534_v29  ;;  %v1572_v59 = vmul.f32 %v1534_v29, %v5424_v25  ;;  %v1494_v0 = vadd.f32 %v4341_v26, %v5388_v33 }
 0x5e5   :  { %v1485_v51 = vpop.f32.mrf.mxu0  ;;  %v1539_v1 = vmul.f32 0.0, %v5435_v34 }
 0x5e6   :  { %v1486_v36 = vadd.f32 %v5388_v33, %v1485_v51  ;;  %v1550_v60 = vadd.f32 %v1549_v57, %v1535_v28  ;;  %v1587_v38 = vadd.f32 %v1586_v32, %v1572_v59  ;;  %v1537_v35 = vmul.f32 0.0, %v5431_v31 }
 0x5e7   :  { %v4344_v40 = vpop.f32.mrf.mxu0  ;;  %v5443_v62 = vmax.f32 %v1494_v0, 0.0  ;;  %v1577_v24 = vmul.f32 %v1539_v1, %v5435_v34 }
 0x5e8   :  { %v5440_v49 = vmax.f32 %v1486_v36, 0.0  ;;  %v1588_v58 = vadd.f32 %v1587_v38, %v1573_v37  ;;  %v1551_v61 = vadd.f32 %v1550_v60, %v1536_v30  ;;  %v1575_v8 = vmul.f32 %v1537_v35, %v5431_v31 }
 0x5e9   :  { %v1498_v63 = vpop.f32.mrf.mxu0  ;;  %v1507_v10 = vadd.f32 %v4344_v40, %v5388_v33  ;;  %v1540_v20 = vmul.f32 0.0, %v5443_v62 }
 0x5ea   :  { %v1538_v2 = vmul.f32 0.0, %v5440_v49  ;;  %v1499_v6 = vadd.f32 %v5388_v33, %v1498_v63  ;;  %v1552_v7 = vadd.f32 %v1551_v61, %v1537_v35  ;;  %v1589_v9 = vadd.f32 %v1588_v58, %v1574_v52 }
 0x5eb   :  { %v4345_v11 = vpop.f32.mrf.mxu0  ;;  %v1527_v27 = vmax.f32 %v1507_v10, 0.0  ;;  %v1578_v14 = vmul.f32 %v1540_v20, %v5443_v62 }
 0x5ec   :  { %v1576_v12 = vmul.f32 %v1538_v2, %v5440_v49  ;;  %v5451_v15 = vmax.f32 %v1499_v6, 0.0  ;;  %v1590_v17 = vadd.f32 %v1589_v9, %v1575_v8  ;;  %v1553_v22 = vadd.f32 %v1552_v7, %v1538_v2 }
 0x5ed   :  { %v1510_v19 = vadd.f32 %v4345_v11, %v5388_v33  ;;  %v1501_v16 = vpop.f32.mrf.mxu0  ;;  %v1543_v57 = vmul.f32 0.0, %v1527_v27 }
 0x5ee   :  { %v1502_v41 = vadd.f32 %v5388_v33, %v1501_v16  ;;  %v1554_v54 = vadd.f32 %v1553_v22, %v1539_v1  ;;  %v1591_v18 = vadd.f32 %v1590_v17, %v1576_v12  ;;  %v1541_v23 = vmul.f32 0.0, %v5451_v15 }
 0x5ef   :  { %v1528_v30 = vmax.f32 %v1510_v19, 0.0  ;;  %v1581_v38 = vmul.f32 %v1543_v57, %v1527_v27 }
 0x5f0   :  { %v1526_v28 = vmax.f32 %v1502_v41, 0.0  ;;  %v1592_v29 = vadd.f32 %v1591_v18, %v1577_v24  ;;  %v1555_v26 = vadd.f32 %v1554_v54, %v1540_v20  ;;  %v1579_v0 = vmul.f32 %v1541_v23, %v5451_v15 }
 0x5f1   :  { %v1544_v33 = vmul.f32 0.0, %v1528_v30 }
 0x5f2   :  { %v1542_v32 = vmul.f32 0.0, %v1526_v28  ;;  %v1556_v59 = vadd.f32 %v1555_v26, %v1541_v23  ;;  %v1593_v51 = vadd.f32 %v1592_v29, %v1578_v14 }
 0x5f3   :  { %v1582_v52 = vmul.f32 %v1544_v33, %v1528_v30 }
 0x5f4   :  { %v1580_v36 = vmul.f32 %v1542_v32, %v1526_v28  ;;  %v1594_v37 = vadd.f32 %v1593_v51, %v1579_v0  ;;  %v1557_v60 = vadd.f32 %v1556_v59, %v1542_v32 }
 0x5f6   :  { %v1558_v35 = vadd.f32 %v1557_v60, %v1543_v57  ;;  %v1595_v40 = vadd.f32 %v1594_v37, %v1580_v36 }
 0x5f8   :  { %v1559_v58 = vadd.f32 %v1558_v35, %v1544_v33  ;;  %v1596_v61 = vadd.f32 %v1595_v40, %v1581_v38 }
 0x5fa   :  { %v1560_v63 = vrot.slane %v1559_v58, 4  ;;  %v1597_v1 = vadd.f32 %v1596_v61, %v1582_v52 }
 0x5fc   :  { %v1561_v2 = vadd.f32 %v1560_v63, %v1559_v58  ;;  %v1598_v6 = vrot.slane %v1597_v1, 4 }
 0x5fe   :  { %v1562_v7 = vrot.slane %v1561_v2, 2  ;;  %v1599_v8 = vadd.f32 %v1598_v6, %v1597_v1 }
 0x600   :  { %v1563_v9 = vadd.f32 %v1562_v7, %v1561_v2  ;;  %v1600_v10 = vrot.slane %v1599_v8, 2 }
 0x602   :  { %v1564_v11 = vrot.slane %v1563_v9, 1  ;;  %v1601_v12 = vadd.f32 %v1600_v10, %v1599_v8 }
 0x604   :  { %v1565_v17 = vadd.f32 %v1564_v11, %v1563_v9  ;;  %v1602_v20 = vrot.slane %v1601_v12, 1  ;;  %v4591_v11 = vld [vmem:[#allocation15 + $0x28] sm:$0xff]  }
 0x606   :  { %v1566_v22 = vmul.f32 0.0625, %v1565_v17  ;;  %v1603_v19 = vadd.f32 %v1602_v20, %v1601_v12  ;;  %v4592_v12 = vld [vmem:[#allocation15 + $0x20] sm:$0xff]   ;;  %v4593_v17 = vld [vmem:[#allocation15 + $0x18] sm:$0xff]  }
 0x608   :  { %v1604_v16 = vmul.f32 0.0625, %v1603_v19  ;;  %v1605_v24 = vmul.f32 %v1566_v22, %v1566_v22  ;;  %v1621_v23 = vsub.f32 %v1526_v28, %v1566_v22  ;;  %v1622_v14 = vsub.f32 %v1527_v27, %v1566_v22 }
 0x609   :  { %v1623_v29 = vsub.f32 %v1528_v30, %v1566_v22  ;;  %v1620_v26 = vsub.f32 %v5451_v15, %v1566_v22  ;;  %v1618_v32 = vsub.f32 %v5435_v34, %v1566_v22  ;;  %v1619_v57 = vsub.f32 %v5443_v62, %v1566_v22 }
 0x60a   :  { %v1606_v41 = vsub.f32 %v1604_v16, %v1605_v24  ;;  %v1614_v0 = vsub.f32 %v5417_v21, %v1566_v22  ;;  %v1615_v51 = vsub.f32 %v5421_v5, %v1566_v22  ;;  %v1612_v36 = vsub.f32 %v5414_v13, %v1566_v22 }
 0x60b   :  { %v1613_v37 = vsub.f32 %v5424_v25, %v1566_v22  ;;  %v1610_v30 = vsub.f32 %v5392_v39, %v1566_v22  ;;  %v1611_v15 = vsub.f32 %v5397_v45, %v1566_v22  ;;  %v1608_v34 = vsub.f32 %v5395_v44, %v1566_v22 }
 0x60c   :  { %v1607_v54 = vmax.f32 %v1606_v41, 0.0  ;;  %v1609_v62 = vsub.f32 %v5401_v4, %v1566_v22  ;;  %v1616_v4 = vsub.f32 %v5431_v31, %v1566_v22  ;;  %v1617_v1 = vsub.f32 %v5440_v49, %v1566_v22  ;;  %v4589_v31 = vld [vmem:[#allocation15 + $0x38] sm:$0xff]   ;;  %v4590_v49 = vld [vmem:[#allocation15 + $0x30] sm:$0xff]  }
 0x60e   :  { %v1624_v18 = vadd.f32 1e-05, %v1607_v54 }
 0x610   :  { %4799 = vrsqrt.f32 %v1624_v18 }
 0x61d   :  { %v4800_v59 = vpop.eup %4799 }
 0x61e   :  { %v1640_v33 = vmul.f32 %v4800_v59, %v1622_v14  ;;  %v1641_v60 = vmul.f32 %v4800_v59, %v1623_v29  ;;  %v1638_v28 = vmul.f32 %v4800_v59, %v1620_v26  ;;  %v1639_v27 = vmul.f32 %v4800_v59, %v1621_v23 }
 0x61f   :  { %v1636_v21 = vmul.f32 %v4800_v59, %v1618_v32  ;;  %v1632_v35 = vmul.f32 %v4800_v59, %v1614_v0  ;;  %v1633_v5 = vmul.f32 %v4800_v59, %v1615_v51  ;;  %v1637_v13 = vmul.f32 %v4800_v59, %v1619_v57 }
 0x620   :  { %v1649_v38 = vpack.c.bf16 %v1641_v60, %v1640_v33  ;;  %v1648_v40 = vpack.c.bf16 %v1639_v27, %v1638_v28  ;;  %v1630_v52 = vmul.f32 %v4800_v59, %v1612_v36  ;;  %v1631_v25 = vmul.f32 %v4800_v59, %v1613_v37 }
 0x621   :  { %v1645_v58 = vpack.c.bf16 %v1633_v5, %v1632_v35  ;;  %v1628_v61 = vmul.f32 %v4800_v59, %v1610_v30  ;;  %v1629_v63 = vmul.f32 %v4800_v59, %v1611_v15  ;;  %v1626_v44 = vmul.f32 %v4800_v59, %v1608_v34  ;;  %v4603_v35 = vld [vmem:[#allocation17 + $0x8] sm:$0xff]   ;;  %v4604_v5 = vld [vmem:[#allocation17] sm:$0xff]  }
 0x622   :  { %4347 = vmatpush3.bf16.msra.mxu1 %v1649_v38  ;;  %4366 = vmatprep.subr.bf16.mxu0 %v1649_v38  ;;  %v1644_v39 = vpack.c.bf16 %v1631_v25, %v1630_v52  ;;  %v1627_v45 = vmul.f32 %v4800_v59, %v1609_v62  ;;  %v1647_v7 = vpack.c.bf16 %v1637_v13, %v1636_v21  ;;  %v4602_v21 = vld [vmem:[#allocation17 + $0x10] sm:$0xff]   ;;  %v5496_v25 = vld [vmem:[%s5689_s12] ss:$0 sm:$0xff] }
 0x623   :  { %4367 = vmatpush3.bf16.msra.mxu0 %v1649_v38  ;;  %4348 = vmatprep.subr.bf16.mxu1 %v5081_v50  ;;  %v1643_v2 = vpack.c.bf16 %v1629_v63, %v1628_v61  ;;  %v1634_v8 = vmul.f32 %v4800_v59, %v1616_v4  ;;  %v1635_v9 = vmul.f32 %v4800_v59, %v1617_v1 }
 0x624   :  { %4368 = vmatprep.subr.bf16.mxu0 %v1648_v40  ;;  %v1642_v6 = vpack.c.bf16 %v1627_v45, %v1626_v44 }
 0x625   :  { %v1646_v10 = vpack.c.bf16 %v1635_v9, %v1634_v8 }
 0x626   :  { %4349 = vmatpush3.bf16.msra.mxu1 %v1648_v40 }
 0x627   :  { %4369 = vmatpush3.bf16.msra.mxu0 %v1648_v40  ;;  %4350 = vmatprep.subr.bf16.mxu1 %v5081_v50  ;;  %v4607_v40 = vld [vmem:[#allocation18 + $0xac] ss:$12 sps:$4 sm:$0xff]  }
 0x628   :  { %4370 = vmatprep.subr.bf16.mxu0 %v1647_v7 }
 0x62a   :  { %4351 = vmatpush3.bf16.msra.mxu1 %v1647_v7 }
 0x62b   :  { %4371 = vmatpush3.bf16.msra.mxu0 %v1647_v7  ;;  %4352 = vmatprep.subr.bf16.mxu1 %v5081_v50 }
 0x62c   :  { %4372 = vmatprep.subr.bf16.mxu0 %v1646_v10 }
 0x62e   :  { %4353 = vmatpush3.bf16.msra.mxu1 %v1646_v10 }
 0x62f   :  { %4373 = vmatpush3.bf16.msra.mxu0 %v1646_v10  ;;  %4354 = vmatprep.subr.bf16.mxu1 %v5081_v50  ;;  %v4605_v10 = vld [vmem:[#allocation18 + $0xa8] ss:$12 sps:$4 sm:$0xff]  }
 0x630   :  { %4374 = vmatprep.subr.bf16.mxu0 %v1645_v58 }
 0x632   :  { %4355 = vmatpush3.bf16.msra.mxu1 %v1645_v58 }
 0x633   :  { %4375 = vmatpush3.bf16.msra.mxu0 %v1645_v58  ;;  %4356 = vmatprep.subr.bf16.mxu1 %v5081_v50 }
 0x634   :  { %4376 = vmatprep.subr.bf16.mxu0 %v1644_v39 }
 0x636   :  { %4357 = vmatpush3.bf16.msra.mxu1 %v1644_v39 }
 0x637   :  { %4377 = vmatpush3.bf16.msra.mxu0 %v1644_v39  ;;  %4358 = vmatprep.subr.bf16.mxu1 %v5081_v50 }
 0x638   :  { %4378 = vmatprep.subr.bf16.mxu0 %v1643_v2 }
 0x63a   :  { %4359 = vmatpush3.bf16.msra.mxu1 %v1643_v2 }
 0x63b   :  { %4379 = vmatpush3.bf16.msra.mxu0 %v1643_v2  ;;  %4360 = vmatprep.subr.bf16.mxu1 %v5081_v50 }
 0x63c   :  { %4380 = vmatprep.subr.bf16.mxu0 %v1642_v6 }
 0x63e   :  { %4361 = vmatpush3.bf16.msra.mxu1 %v1642_v6 }
 0x63f   :  { %4381 = vmatpush3.bf16.msra.mxu0 %v1642_v6  ;;  %4398 = vmatprep.subr.bf16.mxu1 %v4589_v31 }
 0x641   :  { %4363 = vmatmul.mubr.bf16.vlgmr.msra.gmra.mxu1 %v5353_v48  ;;  %v4594_v48 = vld [vmem:[#allocation15 + $0x10] sm:$0xff]  }
 0x642   :  { %4383 = vmatmul.mubr.bf16.vlgmr.msra.gmra.mxu0 %v5356_v42  ;;  %4399 = vmatpush3.bf16.msra.mxu1 %v4589_v31  ;;  %v4595_v42 = vld [vmem:[#allocation15 + $0x8] sm:$0xff]  }
 0x643   :  { %4386 = vmatprep.mubr.bf16.mxu0 %v5359_v43  ;;  %4400 = vmatprep.subr.bf16.mxu1 %v4590_v49  ;;  %v4596_v43 = vld [vmem:[#allocation15] sm:$0xff]  }
 0x646   :  { %4401 = vmatpush3.bf16.msra.mxu1 %v4590_v49 }
 0x647   :  { %4402 = vmatprep.subr.bf16.mxu1 %v4591_v11 }
 0x64a   :  { %4387 = vmatmul.mubr.bf16.gmra.mxu0 %v5362_v46  ;;  %4403 = vmatpush3.bf16.msra.mxu1 %v4591_v11  ;;  %v4597_v46 = vld [vmem:[#allocation17 + $0x38] sm:$0xff]   ;;  %v4610_v11 = vld [vmem:[#allocation18 + $0x94] ss:$12 sps:$4 sm:$0xff]  }
 0x64b   :  { %4390 = vmatprep.mubr.bf16.mxu0 %v5365_v47  ;;  %4404 = vmatprep.subr.bf16.mxu1 %v4592_v12  ;;  %v4598_v47 = vld [vmem:[#allocation17 + $0x30] sm:$0xff]  }
 0x64c   :  { %4430 = vmatprep.subr.bf16.mxu0 %v4597_v46 }
 0x64d   :  { %4431 = vmatpush3.bf16.msra.mxu0 %v4597_v46  ;;  %v4608_v46 = vld [vmem:[#allocation18 + $0x90] ss:$12 sps:$4 sm:$0xff]  }
 0x64e   :  { %4405 = vmatpush3.bf16.msra.mxu1 %v4592_v12  ;;  %4432 = vmatprep.subr.bf16.mxu0 %v4598_v47 }
 0x64f   :  { %4406 = vmatprep.subr.bf16.mxu1 %v4593_v17 }
 0x651   :  { %4433 = vmatpush3.bf16.msra.mxu0 %v4598_v47 }
 0x652   :  { %4391 = vmatmul.mubr.bf16.gmra.mxu0 %v5368_v53  ;;  %4407 = vmatpush3.bf16.msra.mxu1 %v4593_v17  ;;  %v4599_v53 = vld [vmem:[#allocation17 + $0x28] sm:$0xff]  }
 0x653   :  { %4394 = vmatprep.mubr.bf16.mxu0 %v5371_v55  ;;  %4408 = vmatprep.subr.bf16.mxu1 %v4594_v48  ;;  %v4600_v55 = vld [vmem:[#allocation17 + $0x20] sm:$0xff]  }
 0x654   :  { %4434 = vmatprep.subr.bf16.mxu0 %v4599_v53 }
 0x655   :  { %4435 = vmatpush3.bf16.msra.mxu0 %v4599_v53 }
 0x656   :  { %4409 = vmatpush3.bf16.msra.mxu1 %v4594_v48  ;;  %4436 = vmatprep.subr.bf16.mxu0 %v4600_v55 }
 0x657   :  { %4410 = vmatprep.subr.bf16.mxu1 %v4595_v42 }
 0x659   :  { %4437 = vmatpush3.bf16.msra.mxu0 %v4600_v55  ;;  %v4613_v55 = vld [vmem:[#allocation18 + $0x7c] ss:$12 sps:$4 sm:$0xff]  }
 0x65a   :  { %4395 = vmatmul.mubr.bf16.gmra.mxu0 %v5374_v56  ;;  %4411 = vmatpush3.bf16.msra.mxu1 %v4595_v42  ;;  %v4601_v56 = vld [vmem:[#allocation17 + $0x18] sm:$0xff]  }
 0x65b   :  { %4412 = vmatprep.subr.bf16.mxu1 %v4596_v43  ;;  %4438 = vmatprep.subr.bf16.mxu0 %v4601_v56 }
 0x65d   :  { %4439 = vmatpush3.bf16.msra.mxu0 %v4601_v56 }
 0x65e   :  { %4413 = vmatpush3.bf16.msra.mxu1 %v4596_v43  ;;  %4440 = vmatprep.subr.bf16.mxu0 %v4602_v21 }
 0x65f   :  { %4462 = vmatprep.subr.bf16.mxu1 %v5081_v50 }
 0x661   :  { %4441 = vmatpush3.bf16.msra.mxu0 %v4602_v21 }
 0x662   :  { %4442 = vmatprep.subr.bf16.mxu0 %v4603_v35 }
 0x665   :  { %4443 = vmatpush3.bf16.msra.mxu0 %v4603_v35 }
 0x666   :  { %4444 = vmatprep.subr.bf16.mxu0 %v4604_v5 }
 0x669   :  { %4445 = vmatpush3.bf16.msra.mxu0 %v4604_v5 }
 0x66a   :  { %2837 = vmatprep.subr.bf16.mxu0 %v4607_v40 }
 0x701   :  { %v5489_v20 = vpop.f32.mrf.mxu1 }
 0x702   :  { %v4384_v22 = vpop.f32.mrf.mxu0 }
 0x703   :  { %v4364_v19 = vpop.f32.mrf.mxu1 }
 0x704   :  { %v1759_v16 = vpop.f32.mrf.mxu0 }
 0x705   :  { %v1687_v24 = vpop.f32.mrf.mxu1 }
 0x706   :  { %v4385_v41 = vpop.f32.mrf.mxu0 }
 0x707   :  { %v4365_v54 = vpop.f32.mrf.mxu1  ;;  %v1823_v14 = vpack.c.bf16 %v4385_v41, %v4384_v22  ;;  %v4611_v41 = vld [vmem:[#allocation18 + $0x78] ss:$12 sps:$4 sm:$0xff]  }
 0x708   :  { %v1762_v18 = vpop.f32.mrf.mxu0 }
 0x709   :  { %v1822_v23 = vpack.c.bf16 %v1762_v18, %v1759_v16 }
 0x70a   :  { %v4388_v29 = vpop.f32.mrf.mxu0 }
 0x70b   :  { %4414 = vmatprep.mubr.bf16.mxu1 %v1822_v23  ;;  %v4616_v23 = vld [vmem:[#allocation18 + $0x64] ss:$12 sps:$4 sm:$0xff]  }
 0x70c   :  { %v1775_v26 = vpop.f32.mrf.mxu0  ;;  %4415 = vmatmul.mubr.bf16.vlgmr.msra.gmra.mxu1 %v1823_v14 }
 0x70e   :  { %v4389_v32 = vpop.f32.mrf.mxu0 }
 0x70f   :  { %v1825_v0 = vpack.c.bf16 %v4389_v32, %v4388_v29 }
 0x710   :  { %v1778_v57 = vpop.f32.mrf.mxu0 }
 0x711   :  { %v1824_v59 = vpack.c.bf16 %v1778_v57, %v1775_v26 }
 0x712   :  { %v4392_v51 = vpop.f32.mrf.mxu0 }
 0x713   :  { %4418 = vmatprep.mubr.bf16.mxu1 %v1824_v59  ;;  %v4614_v59 = vld [vmem:[#allocation18 + $0x60] ss:$12 sps:$4 sm:$0xff]  }
 0x714   :  { %v1791_v36 = vpop.f32.mrf.mxu0  ;;  %4419 = vmatmul.mubr.bf16.gmra.mxu1 %v1825_v0 }
 0x716   :  { %v4393_v37 = vpop.f32.mrf.mxu0 }
 0x717   :  { %v1827_v28 = vpack.c.bf16 %v4393_v37, %v4392_v51 }
 0x718   :  { %v1794_v33 = vpop.f32.mrf.mxu0 }
 0x719   :  { %v1826_v60 = vpack.c.bf16 %v1794_v33, %v1791_v36  ;;  %v4619_v36 = vld [vmem:[#allocation18 + $0x4c] ss:$12 sps:$4 sm:$0xff]  }
 0x71a   :  { %v4396_v27 = vpop.f32.mrf.mxu0 }
 0x71b   :  { %4422 = vmatprep.mubr.bf16.mxu1 %v1826_v60 }
 0x71c   :  { %v1807_v30 = vpop.f32.mrf.mxu0  ;;  %4423 = vmatmul.mubr.bf16.gmra.mxu1 %v1827_v28 }
 0x71e   :  { %v4397_v15 = vpop.f32.mrf.mxu0 }
 0x71f   :  { %v1829_v38 = vpack.c.bf16 %v4397_v15, %v4396_v27 }
 0x720   :  { %v1810_v34 = vpop.f32.mrf.mxu0 }
 0x721   :  { %v1828_v62 = vpack.c.bf16 %v1810_v34, %v1807_v30  ;;  %v4617_v30 = vld [vmem:[#allocation18 + $0x48] ss:$12 sps:$4 sm:$0xff]  }
 0x723   :  { %4426 = vmatprep.mubr.bf16.mxu1 %v1828_v62  ;;  %v4622_v62 = vld [vmem:[#allocation18 + $0x34] ss:$12 sps:$4 sm:$0xff]  }
 0x724   :  { %4427 = vmatmul.mubr.bf16.gmra.mxu1 %v1829_v38 }
 0x725   :  { %4478 = vmatprep.mubr.msk.bf16.mxu1 %vm5082_vm0, %v5081_v50 }
 0x7cc   :  { %v4416_v13 = vpop.f32.mrf.mxu1 }
 0x7cd   :  { %v1927_v39 = vadd.f32 %v4416_v13, %v5496_v25  ;;  %v4620_v13 = vld [vmem:[#allocation18 + $0x30] ss:$12 sps:$4 sm:$0xff]  }
 0x7ce   :  { %v1918_v52 = vpop.f32.mrf.mxu1 }
 0x7cf   :  { %v1919_v61 = vadd.f32 %v5496_v25, %v1918_v52  ;;  %v1983_v7 = vmax.f32 %v1927_v39, 0.0 }
 0x7d0   :  { %v4417_v58 = vpop.f32.mrf.mxu1 }
 0x7d1   :  { %v1930_v63 = vadd.f32 %v4417_v58, %v5496_v25  ;;  %v1981_v2 = vmax.f32 %v1919_v61, 0.0  ;;  %v4625_v58 = vld [vmem:[#allocation18 + $0x1c] ss:$12 sps:$4 sm:$0xff]  }
 0x7d2   :  { %v1921_v44 = vpop.f32.mrf.mxu1 }
 0x7d3   :  { %v1922_v45 = vadd.f32 %v5496_v25, %v1921_v44  ;;  %v1984_v4 = vmax.f32 %v1930_v63, 0.0 }
 0x7d4   :  { %v4420_v1 = vpop.f32.mrf.mxu1 }
 0x7d5   :  { %v1982_v6 = vmax.f32 %v1922_v45, 0.0  ;;  %v1998_v31 = vpack.c.bf16 %v1984_v4, %v1983_v7  ;;  %v1943_v48 = vadd.f32 %v4420_v1, %v5496_v25  ;;  %v4623_v45 = vld [vmem:[#allocation18 + $0x18] ss:$12 sps:$4 sm:$0xff]   ;;  %v4629_v7 = vld [vmem:[#allocation18 + $0x168] ss:$12 sps:$4 sm:$0xff]  }
 0x7d6   :  { %v1934_v8 = vpop.f32.mrf.mxu1  ;;  %v4628_v1 = vld [vmem:[#allocation18 + $0x4] ss:$12 sps:$4 sm:$0xff]  }
 0x7d7   :  { %v1997_v9 = vpack.c.bf16 %v1982_v6, %v1981_v2  ;;  %v1935_v12 = vadd.f32 %v5496_v25, %v1934_v8  ;;  %v1987_v19 = vmax.f32 %v1943_v48, 0.0  ;;  %v5516_v2 = vpack.c.bf16 %v5489_v20, %v5489_v20  ;;  %v4631_v6 = vld [vmem:[#allocation18 + $0x16c] ss:$12 sps:$4 sm:$0xff]   ;;  %v4634_v8 = vld [vmem:[#allocation18 + $0x154] ss:$12 sps:$4 sm:$0xff]  }
 0x7d8   :  { %v4421_v49 = vpop.f32.mrf.mxu1  ;;  %v4640_v20 = vld [vmem:[#allocation18 + $0x124] ss:$12 sps:$4 sm:$0xff]  }
 0x7d9   :  { %v1946_v17 = vadd.f32 %v4421_v49, %v5496_v25  ;;  %4446 = vmatprep.mubr.bf16.mxu0 %v1997_v9  ;;  %v1985_v56 = vmax.f32 %v1935_v12, 0.0  ;;  %v4632_v9 = vld [vmem:[#allocation18 + $0x150] ss:$12 sps:$4 sm:$0xff]   ;;  %v4638_v49 = vld [vmem:[#allocation18 + $0x120] ss:$12 sps:$4 sm:$0xff]  }
 0x7da   :  { %v1937_v42 = vpop.f32.mrf.mxu1  ;;  %4447 = vmatmul.mubr.bf16.vlgmr.msra.gmra.mxu0 %v1998_v31  ;;  %v4635_v31 = vld [vmem:[#allocation18 + $0x138] ss:$12 sps:$4 sm:$0xff]   ;;  %v4641_v12 = vld [vmem:[#allocation18 + $0x108] ss:$12 sps:$4 sm:$0xff]   ;;  %v4644_v48 = vld [vmem:[#allocation18 + $0xf0] ss:$12 sps:$4 sm:$0xff]  }
 0x7db   :  { %v1938_v43 = vadd.f32 %v5496_v25, %v1937_v42  ;;  %2838 = vmatpush1.bf16.msra.mxu0 %v4605_v10  ;;  %v1988_v47 = vmax.f32 %v1946_v17, 0.0  ;;  %v4637_v10 = vld [vmem:[#allocation18 + $0x13c] ss:$12 sps:$4 sm:$0xff]   ;;  %v4646_v17 = vld [vmem:[#allocation18 + $0xf4] ss:$12 sps:$4 sm:$0xff]  }
 0x7dc   :  { %v4424_v53 = vpop.f32.mrf.mxu1  ;;  %2839 = vmatprep.subr.bf16.mxu0 %v4610_v11  ;;  %v4643_v11 = vld [vmem:[#allocation18 + $0x10c] ss:$12 sps:$4 sm:$0xff]   ;;  %v4649_v42 = vld [vmem:[#allocation18 + $0xdc] ss:$12 sps:$4 sm:$0xff]  }
 0x7dd   :  { %v1986_v22 = vmax.f32 %v1938_v43, 0.0  ;;  %v2000_v54 = vpack.c.bf16 %v1988_v47, %v1987_v19  ;;  %v1959_v26 = vadd.f32 %v4424_v53, %v5496_v25  ;;  %v4647_v43 = vld [vmem:[#allocation18 + $0xd8] ss:$12 sps:$4 sm:$0xff]   ;;  %v4650_v47 = vld [vmem:[#allocation18 + $0xc0] ss:$12 sps:$4 sm:$0xff]   ;;  %v5521_v53 = vpack.c.bf16 %v5378_v3, %v5378_v3 }
 0x7de   :  { %v1950_v16 = vpop.f32.mrf.mxu1  ;;  %v5532_v3 = vld [vmem:[%s5691_s14] ss:$0 sm:$0xff] }
 0x7df   :  { %v1999_v24 = vpack.c.bf16 %v1986_v22, %v1985_v56  ;;  %2840 = vmatpush1.bf16.msra.mxu0 %v4608_v46  ;;  %v1951_v14 = vadd.f32 %v5496_v25, %v1950_v16  ;;  %v1991_v60 = vmax.f32 %v1959_v26, 0.0  ;;  %v4652_v46 = vld [vmem:[#allocation18 + $0xc4] ss:$12 sps:$4 sm:$0xff]   ;;  %v4664_v22 = vld [vmem:[#allocation18 + $0x200] ss:$12 sps:$4 sm:$0xff]  }
 0x7e0   :  { %v4425_v18 = vpop.f32.mrf.mxu1  ;;  %2841 = vmatprep.subr.bf16.mxu0 %v4613_v55  ;;  %v4656_v55 = vld [vmem:[#allocation18 + $0x230] ss:$12 sps:$4 sm:$0xff]   ;;  %v4660_v56 = vld [vmem:[#allocation18 + $0x218] ss:$12 sps:$4 sm:$0xff]   ;;  %v4668_v16 = vld [vmem:[#allocation18 + $0x1e8] ss:$12 sps:$4 sm:$0xff]  }
 0x7e1   :  { %v1962_v29 = vadd.f32 %v4425_v18, %v5496_v25  ;;  %4450 = vmatprep.mubr.bf16.mxu0 %v1999_v24  ;;  %v1989_v37 = vmax.f32 %v1951_v14, 0.0 }
 0x7e2   :  { %v1953_v32 = vpop.f32.mrf.mxu1  ;;  %4451 = vmatmul.mubr.bf16.gmra.mxu0 %v2000_v54 }
 0x7e3   :  { %v1954_v57 = vadd.f32 %v5496_v25, %v1953_v32  ;;  %2842 = vmatpush1.bf16.msra.mxu0 %v4611_v41  ;;  %v1992_v0 = vmax.f32 %v1962_v29, 0.0 }
 0x7e4   :  { %v4428_v51 = vpop.f32.mrf.mxu1  ;;  %2843 = vmatprep.subr.bf16.mxu0 %v4616_v23  ;;  %v4672_v23 = vld [vmem:[#allocation18 + $0x1d0] ss:$12 sps:$4 sm:$0xff]  }
 0x7e5   :  { %v1990_v33 = vmax.f32 %v1954_v57, 0.0  ;;  %v2002_v15 = vpack.c.bf16 %v1992_v0, %v1991_v60  ;;  %v1975_v35 = vadd.f32 %v4428_v51, %v5496_v25  ;;  %v4676_v51 = vld [vmem:[#allocation18 + $0x1b8] ss:$12 sps:$4 sm:$0xff]  }
 0x7e6   :  { %v1966_v28 = vpop.f32.mrf.mxu1 }
 0x7e7   :  { %v2001_v27 = vpack.c.bf16 %v1990_v33, %v1989_v37  ;;  %2844 = vmatpush1.bf16.msra.mxu0 %v4614_v59  ;;  %v1967_v38 = vadd.f32 %v5496_v25, %v1966_v28  ;;  %v1995_v39 = vmax.f32 %v1975_v35, 0.0 }
 0x7e8   :  { %v4429_v34 = vpop.f32.mrf.mxu1  ;;  %2845 = vmatprep.subr.bf16.mxu0 %v4619_v36 }
 0x7e9   :  { %v1978_v21 = vadd.f32 %v4429_v34, %v5496_v25  ;;  %4454 = vmatprep.mubr.bf16.mxu0 %v2001_v27  ;;  %v1993_v61 = vmax.f32 %v1967_v38, 0.0  ;;  %v4680_v38 = vld [vmem:[#allocation18 + $0x1a0] ss:$12 sps:$4 sm:$0xff]  }
 0x7ea   :  { %v1969_v5 = vpop.f32.mrf.mxu1  ;;  %4455 = vmatmul.mubr.bf16.gmra.mxu0 %v2002_v15 }
 0x7eb   :  { %v1970_v40 = vadd.f32 %v5496_v25, %v1969_v5  ;;  %2846 = vmatpush1.bf16.msra.mxu0 %v4617_v30  ;;  %v1996_v52 = vmax.f32 %v1978_v21, 0.0  ;;  %v4626_v25 = vld [vmem:[#allocation18] ss:$12 sps:$4 sm:$0xff]  }
 0x7ec   :  { %2847 = vmatprep.subr.bf16.mxu0 %v4622_v62 }
 0x7ed   :  { %v1994_v63 = vmax.f32 %v1970_v40, 0.0  ;;  %v2004_v4 = vpack.c.bf16 %v1996_v52, %v1995_v39 }
 0x7ef   :  { %v2003_v44 = vpack.c.bf16 %v1994_v63, %v1993_v61  ;;  %2848 = vmatpush1.bf16.msra.mxu0 %v4620_v13 }
 0x7f0   :  { %2849 = vmatprep.subr.bf16.mxu0 %v4625_v58 }
 0x7f1   :  { %4458 = vmatprep.mubr.bf16.mxu0 %v2003_v44 }
 0x7f2   :  { %4459 = vmatmul.mubr.bf16.gmra.mxu0 %v2004_v4 }
 0x7f3   :  { %2850 = vmatpush1.bf16.msra.mxu0 %v4623_v45  ;;  %2869 = vmatprep.mubr.bf16.mxu0 %v5516_v2 }
 0x7f4   :  { %2851 = vmatprep.subr.bf16.mxu0 %v4628_v1 }
 0x7f7   :  { %2852 = vmatpush1.bf16.msra.mxu0 %v4626_v25 }
 0x7f8   :  { %2853 = vmatprep.subr.bf16.mxu0 %v4631_v6 }
 0x7fb   :  { %2854 = vmatpush2.bf16.msra.mxu0 %v4629_v7 }
 0x7fc   :  { %2855 = vmatprep.subr.bf16.mxu0 %v4634_v8 }
 0x7ff   :  { %2856 = vmatpush2.bf16.msra.mxu0 %v4632_v9 }
 0x800   :  { %2857 = vmatprep.subr.bf16.mxu0 %v4637_v10 }
 0x803   :  { %2858 = vmatpush2.bf16.msra.mxu0 %v4635_v31 }
 0x804   :  { %2859 = vmatprep.subr.bf16.mxu0 %v4640_v20 }
 0x807   :  { %2860 = vmatpush2.bf16.msra.mxu0 %v4638_v49 }
 0x808   :  { %2861 = vmatprep.subr.bf16.mxu0 %v4643_v11 }
 0x80b   :  { %2862 = vmatpush2.bf16.msra.mxu0 %v4641_v12 }
 0x80c   :  { %2863 = vmatprep.subr.bf16.mxu0 %v4646_v17 }
 0x80f   :  { %2864 = vmatpush2.bf16.msra.mxu0 %v4644_v48 }
 0x810   :  { %2865 = vmatprep.subr.bf16.mxu0 %v4649_v42 }
 0x813   :  { %2866 = vmatpush2.bf16.msra.mxu0 %v4647_v43 }
 0x814   :  { %2867 = vmatprep.subr.bf16.mxu0 %v4652_v46 }
 0x817   :  { %2868 = vmatpush2.bf16.msra.mxu0 %v4650_v47 }
 0x818   :  { %4482 = vmatprep.subr.bf16.mxu0 %v5081_v50 }
 0x81a   :  { %2870 = vmatmul.mubr.bf16.vlgmr.msra.gmra.mxu0 %v5521_v53 }
 0x81b   :  { %4498 = vmatprep.mubr.msk.bf16.mxu0 %vm5082_vm0, %v5081_v50  ;;  %4483 = vmatpush3.bf16.msra.mxu0 %v4656_v55 }
 0x81c   :  { %4484 = vmatprep.subr.bf16.mxu0 %v5081_v50 }
 0x81f   :  { %4485 = vmatpush3.bf16.msra.mxu0 %v4660_v56 }
 0x820   :  { %4486 = vmatprep.subr.bf16.mxu0 %v5081_v50 }
 0x823   :  { %4487 = vmatpush3.bf16.msra.mxu0 %v4664_v22 }
 0x824   :  { %4488 = vmatprep.subr.bf16.mxu0 %v5081_v50 }
 0x827   :  { %4489 = vmatpush3.bf16.msra.mxu0 %v4668_v16 }
 0x828   :  { %4490 = vmatprep.subr.bf16.mxu0 %v5081_v50 }
 0x82b   :  { %4491 = vmatpush3.bf16.msra.mxu0 %v4672_v23 }
 0x82c   :  { %4492 = vmatprep.subr.bf16.mxu0 %v5081_v50 }
 0x82f   :  { %4493 = vmatpush3.bf16.msra.mxu0 %v4676_v51 }
 0x830   :  { %4494 = vmatprep.subr.bf16.mxu0 %v5081_v50 }
 0x833   :  { %4495 = vmatpush3.bf16.msra.mxu0 %v4680_v38 }
 0x834   :  { %4496 = vmatprep.subr.bf16.mxu0 %v5081_v50 }
 0x89a   :  { %v4448_v19 = vpop.f32.mrf.mxu0 }
 0x89b   :  { %v2102_v24 = vadd.f32 %v4448_v19, %v5532_v3 }
 0x89c   :  { %v2093_v41 = vpop.f32.mrf.mxu0 }
 0x89d   :  { %v2094_v54 = vadd.f32 %v5532_v3, %v2093_v41  ;;  %v5538_v14 = vmax.f32 %v2102_v24, 0.0 }
 0x89e   :  { %v4449_v18 = vpop.f32.mrf.mxu0 }
 0x89f   :  { %v2105_v29 = vadd.f32 %v4449_v18, %v5532_v3  ;;  %v5541_v32 = vmax.f32 %v2094_v54, 0.0  ;;  %v2174_v36 = vmul.f32 0.0, %v5538_v14 }
 0x8a0   :  { %v2096_v26 = vpop.f32.mrf.mxu0 }
 0x8a1   :  { %v5543_v57 = vmax.f32 %v2105_v29, 0.0  ;;  %v2097_v59 = vadd.f32 %v5532_v3, %v2096_v26  ;;  %v2210_v60 = vmul.f32 %v5541_v32, %v5541_v32  ;;  %v2212_v21 = vmul.f32 %v2174_v36, %v5538_v14 }
 0x8a2   :  { %v4452_v0 = vpop.f32.mrf.mxu0 }
 0x8a3   :  { %v5548_v37 = vmax.f32 %v2097_v59, 0.0  ;;  %v2175_v28 = vmul.f32 0.0, %v5543_v57  ;;  %v2118_v15 = vadd.f32 %v4452_v0, %v5532_v3 }
 0x8a4   :  { %v2109_v33 = vpop.f32.mrf.mxu0 }
 0x8a5   :  { %v2188_v27 = vadd.f32 %v5548_v37, %v5541_v32  ;;  %v2211_v30 = vmul.f32 %v5548_v37, %v5548_v37  ;;  %v2110_v34 = vadd.f32 %v5532_v3, %v2109_v33  ;;  %v2213_v58 = vmul.f32 %v2175_v28, %v5543_v57 }
 0x8a6   :  { %v4453_v62 = vpop.f32.mrf.mxu0  ;;  %v5566_v63 = vmax.f32 %v2118_v15, 0.0 }
 0x8a7   :  { %v2189_v35 = vadd.f32 %v2188_v27, %v2174_v36  ;;  %v2226_v5 = vadd.f32 %v2211_v30, %v2210_v60  ;;  %v2121_v40 = vadd.f32 %v4453_v62, %v5532_v3  ;;  %v5562_v13 = vmax.f32 %v2110_v34, 0.0 }
 0x8a8   :  { %v2112_v52 = vpop.f32.mrf.mxu0  ;;  %v2178_v31 = vmul.f32 0.0, %v5566_v63 }
 0x8a9   :  { %v2227_v61 = vadd.f32 %v2226_v5, %v2212_v21  ;;  %v2176_v39 = vmul.f32 0.0, %v5562_v13  ;;  %v2190_v44 = vadd.f32 %v2189_v35, %v2175_v28  ;;  %v2113_v45 = vadd.f32 %v5532_v3, %v2112_v52 }
 0x8aa   :  { %v4456_v4 = vpop.f32.mrf.mxu0  ;;  %v5570_v1 = vmax.f32 %v2121_v40, 0.0  ;;  %v2216_v22 = vmul.f32 %v2178_v31, %v5566_v63 }
 0x8ab   :  { %v2214_v25 = vmul.f32 %v2176_v39, %v5562_v13  ;;  %v2228_v6 = vadd.f32 %v2227_v61, %v2213_v58  ;;  %v5573_v7 = vmax.f32 %v2113_v45, 0.0  ;;  %v2134_v9 = vadd.f32 %v4456_v4, %v5532_v3 }
 0x8ac   :  { %v2125_v8 = vpop.f32.mrf.mxu0  ;;  %v2191_v20 = vadd.f32 %v2190_v44, %v2176_v39  ;;  %v2179_v12 = vmul.f32 0.0, %v5570_v1 }
 0x8ad   :  { %v2126_v10 = vadd.f32 %v5532_v3, %v2125_v8  ;;  %v2177_v49 = vmul.f32 0.0, %v5573_v7  ;;  %v2229_v48 = vadd.f32 %v2228_v6, %v2214_v25  ;;  %v5584_v55 = vmax.f32 %v2134_v9, 0.0 }
 0x8ae   :  { %v4457_v11 = vpop.f32.mrf.mxu0  ;;  %v2217_v18 = vmul.f32 %v2179_v12, %v5570_v1 }
 0x8af   :  { %v5580_v17 = vmax.f32 %v2126_v10, 0.0  ;;  %v2192_v42 = vadd.f32 %v2191_v20, %v2177_v49  ;;  %v2215_v43 = vmul.f32 %v2177_v49, %v5573_v7  ;;  %v2137_v46 = vadd.f32 %v4457_v11, %v5532_v3 }
 0x8b0   :  { %v2128_v47 = vpop.f32.mrf.mxu0  ;;  %v2182_v0 = vmul.f32 0.0, %v5584_v55 }
 0x8b1   :  { %v2129_v56 = vadd.f32 %v5532_v3, %v2128_v47  ;;  %v2193_v19 = vadd.f32 %v2192_v42, %v2178_v31  ;;  %v2230_v16 = vadd.f32 %v2229_v48, %v2215_v43  ;;  %v2180_v24 = vmul.f32 0.0, %v5580_v17 }
 0x8b2   :  { %v4460_v41 = vpop.f32.mrf.mxu0  ;;  %v5592_v26 = vmax.f32 %v2137_v46, 0.0  ;;  %v2220_v40 = vmul.f32 %v2182_v0, %v5584_v55 }
 0x8b3   :  { %v5589_v54 = vmax.f32 %v2129_v56, 0.0  ;;  %v2231_v23 = vadd.f32 %v2230_v16, %v2216_v22  ;;  %v2194_v29 = vadd.f32 %v2193_v19, %v2179_v12  ;;  %v2218_v60 = vmul.f32 %v2180_v24, %v5580_v17 }
 0x8b4   :  { %v2141_v59 = vpop.f32.mrf.mxu0  ;;  %v2150_v27 = vadd.f32 %v4460_v41, %v5532_v3  ;;  %v2183_v38 = vmul.f32 0.0, %v5592_v26 }
 0x8b5   :  { %v2181_v51 = vmul.f32 0.0, %v5589_v54  ;;  %v2142_v36 = vadd.f32 %v5532_v3, %v2141_v59  ;;  %v2195_v33 = vadd.f32 %v2194_v29, %v2180_v24  ;;  %v2232_v28 = vadd.f32 %v2231_v23, %v2217_v18 }
 0x8b6   :  { %v4461_v30 = vpop.f32.mrf.mxu0  ;;  %v2170_v39 = vmax.f32 %v2150_v27, 0.0  ;;  %v2221_v4 = vmul.f32 %v2183_v38, %v5592_v26 }
 0x8b7   :  { %v2219_v15 = vmul.f32 %v2181_v51, %v5589_v54  ;;  %v5600_v34 = vmax.f32 %v2142_v36, 0.0  ;;  %v2233_v62 = vadd.f32 %v2232_v28, %v2218_v60  ;;  %v2196_v21 = vadd.f32 %v2195_v33, %v2181_v51 }
 0x8b8   :  { %v2153_v35 = vadd.f32 %v4461_v30, %v5532_v3  ;;  %v2144_v5 = vpop.f32.mrf.mxu0  ;;  %v2186_v10 = vmul.f32 0.0, %v2170_v39 }
 0x8b9   :  { %v2145_v52 = vadd.f32 %v5532_v3, %v2144_v5  ;;  %v2197_v58 = vadd.f32 %v2196_v21, %v2182_v0  ;;  %v2234_v61 = vadd.f32 %v2233_v62, %v2219_v15  ;;  %v2184_v44 = vmul.f32 0.0, %v5600_v34 }
 0x8ba   :  { %v2171_v8 = vmax.f32 %v2153_v35, 0.0  ;;  %v2224_v42 = vmul.f32 %v2186_v10, %v2170_v39 }
 0x8bb   :  { %v2169_v45 = vmax.f32 %v2145_v52, 0.0  ;;  %v2235_v25 = vadd.f32 %v2234_v61, %v2220_v40  ;;  %v2198_v6 = vadd.f32 %v2197_v58, %v2183_v38  ;;  %v2222_v20 = vmul.f32 %v2184_v44, %v5600_v34 }
 0x8bc   :  { %v2187_v3 = vmul.f32 0.0, %v2171_v8 }
 0x8bd   :  { %v2185_v9 = vmul.f32 0.0, %v2169_v45  ;;  %v2199_v31 = vadd.f32 %v2198_v6, %v2184_v44  ;;  %v2236_v49 = vadd.f32 %v2235_v25, %v2221_v4 }
 0x8be   :  { %v2225_v47 = vmul.f32 %v2187_v3, %v2171_v8 }
 0x8bf   :  { %v2223_v11 = vmul.f32 %v2185_v9, %v2169_v45  ;;  %v2237_v12 = vadd.f32 %v2236_v49, %v2222_v20  ;;  %v2200_v48 = vadd.f32 %v2199_v31, %v2185_v9 }
 0x8c1   :  { %v2201_v43 = vadd.f32 %v2200_v48, %v2186_v10  ;;  %v2238_v46 = vadd.f32 %v2237_v12, %v2223_v11 }
 0x8c3   :  { %v2202_v56 = vadd.f32 %v2201_v43, %v2187_v3  ;;  %v2239_v22 = vadd.f32 %v2238_v46, %v2224_v42 }
 0x8c5   :  { %v2203_v19 = vrot.slane %v2202_v56, 4  ;;  %v2240_v16 = vadd.f32 %v2239_v22, %v2225_v47 }
 0x8c7   :  { %v2204_v24 = vadd.f32 %v2203_v19, %v2202_v56  ;;  %v2241_v41 = vrot.slane %v2240_v16, 4 }
 0x8c9   :  { %v2205_v18 = vrot.slane %v2204_v24, 2  ;;  %v2242_v23 = vadd.f32 %v2241_v41, %v2240_v16 }
 0x8cb   :  { %v2206_v29 = vadd.f32 %v2205_v18, %v2204_v24  ;;  %v2243_v59 = vrot.slane %v2242_v23, 2 }
 0x8cd   :  { %v2207_v0 = vrot.slane %v2206_v29, 1  ;;  %v2244_v51 = vadd.f32 %v2243_v59, %v2242_v23  ;;  %v4659_v23 = vld [vmem:[#allocation18 + $0x214] ss:$12 sps:$4 sm:$0xff]   ;;  %v4657_v59 = vld [vmem:[#allocation18 + $0x210] ss:$12 sps:$4 sm:$0xff]  }
 0x8cf   :  { %v2208_v36 = vadd.f32 %v2207_v0, %v2206_v29  ;;  %v2245_v33 = vrot.slane %v2244_v51, 1  ;;  %v4811_v29 = vld [vmem:[#allocation8] sm:$0xf] }
 0x8d0   :  { %v4663_v0 = vld [vmem:[#allocation18 + $0x1fc] ss:$12 sps:$4 sm:$0xff]  }
 0x8d1   :  { %v2209_v60 = vmul.f32 0.0625, %v2208_v36  ;;  %v2246_v28 = vadd.f32 %v2245_v33, %v2244_v51  ;;  %v4661_v51 = vld [vmem:[#allocation18 + $0x1f8] ss:$12 sps:$4 sm:$0xff]   ;;  %v4665_v33 = vld [vmem:[#allocation18 + $0x1e0] ss:$12 sps:$4 sm:$0xff]  }
 0x8d2   :  { %v4667_v36 = vld [vmem:[#allocation18 + $0x1e4] ss:$12 sps:$4 sm:$0xff]  }
 0x8d3   :  { %v2247_v27 = vmul.f32 0.0625, %v2246_v28  ;;  %v2248_v30 = vmul.f32 %v2209_v60, %v2209_v60  ;;  %v2264_v52 = vsub.f32 %v2169_v45, %v2209_v60  ;;  %v2265_v58 = vsub.f32 %v2170_v39, %v2209_v60  ;;  %v4669_v28 = vld [vmem:[#allocation18 + $0x1c8] ss:$12 sps:$4 sm:$0xff]  }
 0x8d4   :  { %v2266_v61 = vsub.f32 %v2171_v8, %v2209_v60  ;;  %v2263_v4 = vsub.f32 %v5600_v34, %v2209_v60  ;;  %v2261_v25 = vsub.f32 %v5584_v55, %v2209_v60  ;;  %v2257_v6 = vsub.f32 %v5566_v63, %v2209_v60 }
 0x8d5   :  { %v2249_v15 = vsub.f32 %v2247_v27, %v2248_v30  ;;  %v2258_v9 = vsub.f32 %v5570_v1, %v2209_v60  ;;  %v2255_v20 = vsub.f32 %v5562_v13, %v2209_v60  ;;  %v2256_v49 = vsub.f32 %v5573_v7, %v2209_v60  ;;  %v4675_v27 = vld [vmem:[#allocation18 + $0x1b4] ss:$12 sps:$4 sm:$0xff]   ;;  %v4673_v30 = vld [vmem:[#allocation18 + $0x1b0] ss:$12 sps:$4 sm:$0xff]  }
 0x8d6   :  { %v2253_v45 = vsub.f32 %v5538_v14, %v2209_v60  ;;  %v2254_v39 = vsub.f32 %v5543_v57, %v2209_v60  ;;  %v2251_v8 = vsub.f32 %v5541_v32, %v2209_v60  ;;  %v2262_v63 = vsub.f32 %v5592_v26, %v2209_v60 }
 0x8d7   :  { %v2250_v62 = vmax.f32 %v2249_v15, 0.0  ;;  %v2252_v42 = vsub.f32 %v5548_v37, %v2209_v60  ;;  %v2259_v26 = vsub.f32 %v5580_v17, %v2209_v60  ;;  %v2260_v16 = vsub.f32 %v5589_v54, %v2209_v60  ;;  %v4655_v17 = vld [vmem:[#allocation18 + $0x22c] ss:$12 sps:$4 sm:$0xff]   ;;  %v4653_v54 = vld [vmem:[#allocation18 + $0x228] ss:$12 sps:$4 sm:$0xff]  }
 0x8d8   :  { %v4671_v60 = vld [vmem:[#allocation18 + $0x1cc] ss:$12 sps:$4 sm:$0xff]   ;;  %v4679_v15 = vld [vmem:[#allocation18 + $0x19c] ss:$12 sps:$4 sm:$0xff]  }
 0x8d9   :  { %v2267_v38 = vadd.f32 1e-05, %v2250_v62  ;;  %v4677_v62 = vld [vmem:[#allocation18 + $0x198] ss:$12 sps:$4 sm:$0xff]  }
 0x8da   :  { %v5609_v21 = vpop.f32.mrf.mxu0 }
 0x8db   :  { %4801 = vrsqrt.f32 %v2267_v38  ;;  %v4683_v38 = vld [vmem:[#allocation18 + $0x184] ss:$12 sps:$4 sm:$0xff]  }
 0x8dc   :  { %v5611_v35 = vpop.f32.mrf.mxu0 }
 0x8de   :  { %v2875_v5 = vpop.f32.mrf.mxu0 }
 0x8df   :  { %v4681_v5 = vld [vmem:[#allocation18 + $0x180] ss:$12 sps:$4 sm:$0xff]  }
 0x8e0   :  { %v2876_v40 = vpop.f32.mrf.mxu0 }
 0x8e1   :  { %v4684_v40 = vld [vmem:[#allocation18 + $0x188] ss:$12 sps:$4 sm:$0xff]  }
 0x8e2   :  { %4497 = vmatpush3.bf16.msra.mxu0 %v4684_v40  ;;  %v4748_v40 = vld [vmem:[#allocation20 + $0xc4] ss:$12 sps:$4 sm:$0xff]  }
 0x8e8   :  { %v4802_v44 = vpop.eup %4801 }
 0x8e9   :  { %v2283_v10 = vmul.f32 %v4802_v44, %v2265_v58  ;;  %v2284_v31 = vmul.f32 %v4802_v44, %v2266_v61  ;;  %v2282_v11 = vmul.f32 %v4802_v44, %v2264_v52  ;;  %v2281_v12 = vmul.f32 %v4802_v44, %v2263_v4  ;;  %v4685_v52 = vld [vmem:[#allocation18 + $0x170] ss:$12 sps:$4 sm:$0xff]  }
 0x8ea   :  { %v2275_v55 = vmul.f32 %v4802_v44, %v2257_v6  ;;  %v2276_v3 = vmul.f32 %v4802_v44, %v2258_v9  ;;  %v2273_v1 = vmul.f32 %v4802_v44, %v2255_v20  ;;  %v2274_v48 = vmul.f32 %v4802_v44, %v2256_v49  ;;  %v4690_v49 = vld [vmem:[#allocation18 + $0x80] ss:$12 sps:$4 sm:$0xff]  }
 0x8eb   :  { %v2292_v34 = vpack.c.bf16 %v2284_v31, %v2283_v10  ;;  %v2271_v7 = vmul.f32 %v4802_v44, %v2253_v45  ;;  %v2272_v43 = vmul.f32 %v4802_v44, %v2254_v39  ;;  %v2269_v46 = vmul.f32 %v4802_v44, %v2251_v8  ;;  %v4688_v10 = vld [vmem:[#allocation18 + $0x98] ss:$12 sps:$4 sm:$0xff]   ;;  %v4689_v31 = vld [vmem:[#allocation18 + $0x140] ss:$12 sps:$4 sm:$0xff]   ;;  %v4692_v45 = vld [vmem:[#allocation18 + $0x68] ss:$12 sps:$4 sm:$0xff]  }
 0x8ec   :  { %v2288_v13 = vpack.c.bf16 %v2276_v3, %v2275_v55  ;;  %v2287_v14 = vpack.c.bf16 %v2274_v48, %v2273_v1  ;;  %v2270_v57 = vmul.f32 %v4802_v44, %v2252_v42  ;;  %v2291_v32 = vpack.c.bf16 %v2282_v11, %v2281_v12  ;;  %v4691_v11 = vld [vmem:[#allocation18 + $0x128] ss:$12 sps:$4 sm:$0xff]   ;;  %v4693_v39 = vld [vmem:[#allocation18 + $0x110] ss:$12 sps:$4 sm:$0xff]   ;;  %v4696_v12 = vld [vmem:[#allocation18 + $0x38] ss:$12 sps:$4 sm:$0xff]  }
 0x8ed   :  { %4463 = vmatpush3.bf16.msra.mxu1 %v2292_v34  ;;  %v2279_v47 = vmul.f32 %v4802_v44, %v2261_v25  ;;  %v2280_v56 = vmul.f32 %v4802_v44, %v2262_v63  ;;  %v2286_v22 = vpack.c.bf16 %v2272_v43, %v2271_v7  ;;  %v2277_v24 = vmul.f32 %v4802_v44, %v2259_v26  ;;  %v4687_v25 = vld [vmem:[#allocation18 + $0x158] ss:$12 sps:$4 sm:$0xff]   ;;  %v4694_v8 = vld [vmem:[#allocation18 + $0x50] ss:$12 sps:$4 sm:$0xff]   ;;  %v4698_v55 = vld [vmem:[#allocation18 + $0x20] ss:$12 sps:$4 sm:$0xff]  }
 0x8ee   :  { %4464 = vmatprep.subr.bf16.mxu1 %v5081_v50  ;;  %v2285_v19 = vpack.c.bf16 %v2270_v57, %v2269_v46  ;;  %v2278_v41 = vmul.f32 %v4802_v44, %v2260_v16  ;;  %v5083_v58 = vmov 0   ;;  %v4686_v44 = vld [vmem:[#allocation18 + $0xb0] ss:$12 sps:$4 sm:$0xff]   ;;  %v4695_v34 = vld [vmem:[#allocation18 + $0xf8] ss:$12 sps:$4 sm:$0xff]  }
 0x8ef   :  { %v2290_v37 = vpack.c.bf16 %v2280_v56, %v2279_v47  ;;  %v4699_v3 = vld [vmem:[#allocation18 + $0xc8] ss:$12 sps:$4 sm:$0xff]   ;;  %v4703_v1 = vld [vmem:[#allocation20 + $0xac] ss:$12 sps:$4 sm:$0xff]   ;;  %v4712_v46 = vld [vmem:[#allocation20 + $0x64] ss:$12 sps:$4 sm:$0xff]  }
 0x8f0   :  { %v2289_v18 = vpack.c.bf16 %v2278_v41, %v2277_v24  ;;  %v4700_v63 = vld [vmem:[#allocation18 + $0x8] ss:$12 sps:$4 sm:$0xff]   ;;  %v4707_v43 = vld [vmem:[#allocation20 + $0x78] ss:$12 sps:$4 sm:$0xff]   ;;  %v4716_v56 = vld [vmem:[#allocation20 + $0x30] ss:$12 sps:$4 sm:$0xff]  }
 0x8f1   :  { %4465 = vmatpush3.bf16.msra.mxu1 %v2291_v32  ;;  %v4701_v48 = vld [vmem:[#allocation20 + $0xa8] ss:$12 sps:$4 sm:$0xff]   ;;  %v4715_v57 = vld [vmem:[#allocation20 + $0x4c] ss:$12 sps:$4 sm:$0xff]   ;;  %v4728_v41 = vld [vmem:[#allocation20 + $0x150] ss:$12 sps:$4 sm:$0xff]  }
 0x8f2   :  { %4466 = vmatprep.subr.bf16.mxu1 %v5081_v50  ;;  %v4706_v42 = vld [vmem:[#allocation20 + $0x94] ss:$12 sps:$4 sm:$0xff]   ;;  %v4709_v7 = vld [vmem:[#allocation20 + $0x7c] ss:$12 sps:$4 sm:$0xff]   ;;  %v4727_v16 = vld [vmem:[#allocation20 + $0x16c] ss:$12 sps:$4 sm:$0xff]  }
 0x8f3   :  { %v4713_v32 = vld [vmem:[#allocation20 + $0x48] ss:$12 sps:$4 sm:$0xff]   ;;  %v4722_v26 = vld [vmem:[#allocation20] ss:$12 sps:$4 sm:$0xff]  }
 0x8f4   :  { %v4718_v47 = vld [vmem:[#allocation20 + $0x34] ss:$12 sps:$4 sm:$0xff]  }
 0x8f5   :  { %4467 = vmatpush3.bf16.msra.mxu1 %v2290_v37  ;;  %v4725_v37 = vld [vmem:[#allocation20 + $0x168] ss:$12 sps:$4 sm:$0xff]  }
 0x8f6   :  { %4468 = vmatprep.subr.bf16.mxu1 %v5081_v50  ;;  %v4730_v24 = vld [vmem:[#allocation20 + $0x154] ss:$12 sps:$4 sm:$0xff]  }
 0x8f9   :  { %4469 = vmatpush3.bf16.msra.mxu1 %v2289_v18  ;;  %v4733_v18 = vld [vmem:[#allocation20 + $0x13c] ss:$12 sps:$4 sm:$0xff]  }
 0x8fa   :  { %4470 = vmatprep.subr.bf16.mxu1 %v5081_v50 }
 0x8fd   :  { %4471 = vmatpush3.bf16.msra.mxu1 %v2288_v13  ;;  %v4704_v13 = vld [vmem:[#allocation20 + $0x90] ss:$12 sps:$4 sm:$0xff]  }
 0x8fe   :  { %4472 = vmatprep.subr.bf16.mxu1 %v5081_v50 }
 0x901   :  { %4473 = vmatpush3.bf16.msra.mxu1 %v2287_v14  ;;  %v4710_v14 = vld [vmem:[#allocation20 + $0x60] ss:$12 sps:$4 sm:$0xff]  }
 0x902   :  { %4474 = vmatprep.subr.bf16.mxu1 %v5081_v50 }
 0x905   :  { %4475 = vmatpush3.bf16.msra.mxu1 %v2286_v22  ;;  %v4719_v22 = vld [vmem:[#allocation20 + $0x18] ss:$12 sps:$4 sm:$0xff]  }
 0x906   :  { %4476 = vmatprep.subr.bf16.mxu1 %v5081_v50 }
 0x909   :  { %4477 = vmatpush3.bf16.msra.mxu1 %v2285_v19  ;;  %v4724_v19 = vld [vmem:[#allocation20 + $0x4] ss:$12 sps:$4 sm:$0xff]  }
 0x90a   :  { %2878 = vmatprep.subr.bf16.mxu1 %v4655_v17  ;;  %v4731_v17 = vld [vmem:[#allocation20 + $0x138] ss:$12 sps:$4 sm:$0xff]  }
 0x90c   :  { %4479 = vmatmul.mubr.bf16.vlgmr.msra.gmra.mxu1 %v4811_v29  ;;  %v4739_v29 = vld [vmem:[#allocation20 + $0x10c] ss:$12 sps:$4 sm:$0xff]  }
 0x90d   :  { %2879 = vmatpush1.bf16.msra.mxu1 %v4653_v54  ;;  %2910 = vmatprep.mubr.bf16.mxu1 %v5083_v58  ;;  %v4736_v54 = vld [vmem:[#allocation20 + $0x124] ss:$12 sps:$4 sm:$0xff]  }
 0x90e   :  { %2880 = vmatprep.subr.bf16.mxu1 %v4659_v23  ;;  %v4734_v23 = vld [vmem:[#allocation20 + $0x120] ss:$12 sps:$4 sm:$0xff]  }
 0x911   :  { %2881 = vmatpush1.bf16.msra.mxu1 %v4657_v59  ;;  %v4749_v59 = vld [vmem:[#allocation20 + $0x228] ss:$12 sps:$4 sm:$0xff]  }
 0x912   :  { %2882 = vmatprep.subr.bf16.mxu1 %v4663_v0  ;;  %v4751_v0 = vld [vmem:[#allocation20 + $0x22c] ss:$12 sps:$4 sm:$0xff]  }
 0x913   :  { %3543 = vmatprep.subr.bf16.mxu0 %v4751_v0 }
 0x915   :  { %2883 = vmatpush1.bf16.msra.mxu1 %v4661_v51  ;;  %v4755_v51 = vld [vmem:[#allocation20 + $0x214] ss:$12 sps:$4 sm:$0xff]  }
 0x916   :  { %2884 = vmatprep.subr.bf16.mxu1 %v4667_v36  ;;  %v4737_v36 = vld [vmem:[#allocation20 + $0x108] ss:$12 sps:$4 sm:$0xff]  }
 0x919   :  { %2885 = vmatpush1.bf16.msra.mxu1 %v4665_v33  ;;  %v4753_v33 = vld [vmem:[#allocation20 + $0x210] ss:$12 sps:$4 sm:$0xff]  }
 0x91a   :  { %2886 = vmatprep.subr.bf16.mxu1 %v4671_v60  ;;  %v4742_v60 = vld [vmem:[#allocation20 + $0xf4] ss:$12 sps:$4 sm:$0xff]  }
 0x91d   :  { %2887 = vmatpush1.bf16.msra.mxu1 %v4669_v28  ;;  %v4759_v28 = vld [vmem:[#allocation20 + $0x1fc] ss:$12 sps:$4 sm:$0xff]  }
 0x91e   :  { %2888 = vmatprep.subr.bf16.mxu1 %v4675_v27  ;;  %v4740_v27 = vld [vmem:[#allocation20 + $0xf0] ss:$12 sps:$4 sm:$0xff]  }
 0x921   :  { %2889 = vmatpush1.bf16.msra.mxu1 %v4673_v30  ;;  %v4757_v30 = vld [vmem:[#allocation20 + $0x1f8] ss:$12 sps:$4 sm:$0xff]  }
 0x922   :  { %2890 = vmatprep.subr.bf16.mxu1 %v4679_v15  ;;  %v4745_v15 = vld [vmem:[#allocation20 + $0xdc] ss:$12 sps:$4 sm:$0xff]  }
 0x925   :  { %2891 = vmatpush1.bf16.msra.mxu1 %v4677_v62  ;;  %v4763_v62 = vld [vmem:[#allocation20 + $0x1e4] ss:$12 sps:$4 sm:$0xff]  }
 0x926   :  { %2892 = vmatprep.subr.bf16.mxu1 %v4683_v38  ;;  %v4743_v38 = vld [vmem:[#allocation20 + $0xd8] ss:$12 sps:$4 sm:$0xff]  }
 0x929   :  { %2893 = vmatpush1.bf16.msra.mxu1 %v4681_v5  ;;  %v4761_v5 = vld [vmem:[#allocation20 + $0x1e0] ss:$12 sps:$4 sm:$0xff]  }
 0x92a   :  { %4072 = vmatprep.subr.bf16.mxu1 %v4685_v52  ;;  %v4767_v52 = vld [vmem:[#allocation20 + $0x1cc] ss:$12 sps:$4 sm:$0xff]  }
 0x9cc   :  { %v2327_v61 = vpop.f32.mrf.mxu1 }
 0x9cd   :  { %v2339_v4 = vpack.c.bf16 %v2327_v61, %v2327_v61  ;;  %v4765_v61 = vld [vmem:[#allocation20 + $0x1c8] ss:$12 sps:$4 sm:$0xff]  }
 0x9ce   :  { %v4480_v6 = vpop.f32.mrf.mxu1 }
 0x9cf   :  { %2911 = vmatmul.mubr.bf16.vlgmr.msra.gmra.mxu1 %v2339_v4  ;;  %4499 = vmatmul.mubr.bf16.vlgmr.msra.gmra.mxu0 %v2339_v4  ;;  %v4771_v4 = vld [vmem:[#allocation20 + $0x1b4] ss:$12 sps:$4 sm:$0xff]   ;;  %v4773_v6 = vld [vmem:[#allocation20 + $0x198] ss:$12 sps:$4 sm:$0xff]  }
 0x9d0   :  { %4073 = vmatpush3.bf16.msra.mxu1 %v4686_v44  ;;  %v2330_v9 = vpop.f32.mrf.mxu1  ;;  %2951 = vmatprep.mubr.bf16.mxu1 %v5516_v2  ;;  %v4697_v2 = vld [vmem:[#allocation18 + $0xe0] ss:$12 sps:$4 sm:$0xff]   ;;  %v4769_v44 = vld [vmem:[#allocation20 + $0x1b0] ss:$12 sps:$4 sm:$0xff]  }
 0x9d1   :  { %4074 = vmatprep.subr.bf16.mxu1 %v4687_v25  ;;  %3575 = vmatprep.mubr.bf16.mxu0 %v5083_v58  ;;  %v4746_v58 = vld [vmem:[#allocation20 + $0xc0] ss:$12 sps:$4 sm:$0xff]   ;;  %v4775_v25 = vld [vmem:[#allocation20 + $0x19c] ss:$12 sps:$4 sm:$0xff]   ;;  %v4779_v9 = vld [vmem:[#allocation20 + $0x184] ss:$12 sps:$4 sm:$0xff]  }
 0x9d2   :  { %v4481_v20 = vpop.f32.mrf.mxu1  ;;  %3544 = vmatpush1.bf16.msra.mxu0 %v4749_v59 }
 0x9d3   :  { %3545 = vmatprep.subr.bf16.mxu0 %v4755_v51  ;;  %v2438_v20 = vlaneseq  ;;  %v4782_v51 = vld [vmem:[#allocation20 + $0xb0] ss:$12 sps:$4 sm:$0xff]  }
 0x9d4   :  { %4075 = vmatpush3.bf16.msra.mxu1 %v4688_v10  ;;  %v4777_v10 = vld [vmem:[#allocation20 + $0x180] ss:$12 sps:$4 sm:$0xff]  }
 0x9d5   :  { %4076 = vmatprep.subr.bf16.mxu1 %v4689_v31  ;;  %v4781_v31 = vld [vmem:[#allocation20 + $0x170] ss:$12 sps:$4 sm:$0xff]  }
 0x9d6   :  { %3546 = vmatpush1.bf16.msra.mxu0 %v4753_v33  ;;  %v4783_v33 = vld [vmem:[#allocation20 + $0x158] ss:$12 sps:$4 sm:$0xff]  }
 0x9d7   :  { %3547 = vmatprep.subr.bf16.mxu0 %v4759_v28  ;;  %v4785_v28 = vld [vmem:[#allocation20 + $0x140] ss:$12 sps:$4 sm:$0xff]  }
 0x9d8   :  { %4077 = vmatpush3.bf16.msra.mxu1 %v4690_v49  ;;  %v5636_v49 = vshrl.u32 %v2438_v20, 7 }
 0x9d9   :  { %4078 = vmatprep.subr.bf16.mxu1 %v4691_v11 }
 0x9da   :  { %3548 = vmatpush1.bf16.msra.mxu0 %v4757_v30  ;;  %v2440_v11 = vsub.s32 0, %v5636_v49  ;;  %v4787_v30 = vld [vmem:[#allocation20 + $0x128] ss:$12 sps:$4 sm:$0xff]  }
 0x9db   :  { %3549 = vmatprep.subr.bf16.mxu0 %v4763_v62  ;;  %v4790_v62 = vld [vmem:[#allocation20 + $0x50] ss:$12 sps:$4 sm:$0xff]  }
 0x9dc   :  { %4079 = vmatpush3.bf16.msra.mxu1 %v4692_v45  ;;  %v2436_v45 = vld [vmem:[%s5693_s16] sm:$0x7] }
 0x9dd   :  { %4080 = vmatprep.subr.bf16.mxu1 %v4693_v39  ;;  %v2444_v39 = vsub.s32 1, %v5636_v49 }
 0x9de   :  { %3550 = vmatpush1.bf16.msra.mxu0 %v4761_v5  ;;  %v4792_v5 = vld [vmem:[#allocation20 + $0x38] ss:$12 sps:$4 sm:$0xff]  }
 0x9df   :  { %3551 = vmatprep.subr.bf16.mxu0 %v4767_v52  ;;  %v4794_v52 = vld [vmem:[#allocation20 + $0x20] ss:$12 sps:$4 sm:$0xff]  }
 0x9e0   :  { %4081 = vmatpush3.bf16.msra.mxu1 %v4694_v8  ;;  %v2441_v8 = vrot.slane %v2436_v45, %v2440_v11 }
 0x9e1   :  { %4082 = vmatprep.subr.bf16.mxu1 %v4695_v34  ;;  %v2445_v34 = vrot.slane %v2436_v45, %v2444_v39 }
 0x9e2   :  { %3552 = vmatpush1.bf16.msra.mxu0 %v4765_v61  ;;  %v4796_v61 = vld [vmem:[#allocation20 + $0x8] ss:$12 sps:$4 sm:$0xff]  }
 0x9e3   :  { %3553 = vmatprep.subr.bf16.mxu0 %v4771_v4 }
 0x9e4   :  { %4083 = vmatpush3.bf16.msra.mxu1 %v4696_v12  ;;  %v2872_v12 = vadd.f32 %v5609_v21, %v2441_v8  ;;  %v4756_v21 = vld [vmem:[#allocation20 + $0x218] ss:$12 sps:$4 sm:$0xff]  }
 0x9e5   :  { %4084 = vmatprep.subr.bf16.mxu1 %v4697_v2 }
 0x9e6   :  { %3554 = vmatpush1.bf16.msra.mxu0 %v4769_v44 }
 0x9e7   :  { %3555 = vmatprep.subr.bf16.mxu0 %v4775_v25 }
 0x9e8   :  { %4085 = vmatpush3.bf16.msra.mxu1 %v4698_v55 }
 0x9e9   :  { %4086 = vmatprep.subr.bf16.mxu1 %v4699_v3  ;;  %v2874_v3 = vadd.f32 %v5611_v35, %v2445_v34  ;;  %v4760_v35 = vld [vmem:[#allocation20 + $0x200] ss:$12 sps:$4 sm:$0xff]  }
 0x9ea   :  { %3556 = vmatpush1.bf16.msra.mxu0 %v4773_v6 }
 0x9eb   :  { %3557 = vmatprep.subr.bf16.mxu0 %v4779_v9  ;;  %v3101_v9 = vld [vmem:[%s5695_s18] sm:$0x7]  ;;  %s5084_s18 = smov [#allocation21]  }
 0x9ec   :  { %4087 = vmatpush3.bf16.msra.mxu1 %v4700_v63  ;;  %s3673_s23 = sshll.u32 %s5084_s18, 4  ;;  %s3674_s23 = int_to_ptr.vmem [resolvable:$true] %s3673_s23 }
 0x9ed   :  { %3502 = vmatprep.subr.bf16.mxu1 %v4703_v1  ;;  %s5032_s25 = scalar_lea.vmem %s3674_s23, 384  ;;  %p5037_p0 = scmp.lt.s32.totalorder %s3674_s23, %s3674_s23 }
 0x9ee   :  { %3558 = vmatpush1.bf16.msra.mxu0 %v4777_v10  ;;  %v3106_v10 = vrot.slane %v3101_v9, %v2440_v11  ;;  %p5033_p13 = scmp.ne.s32.totalorder %s3674_s23, %s5032_s25  ;;  %p5038_p1 = scmp.lt.s32.totalorder %s5032_s25, %s5032_s25 }
 0x9ef   :  { %2952 = vmatmul.mubr.bf16.vlgmr.msra.gmra.mxu1 %v5521_v53  ;;  %v4721_v53 = vld [vmem:[#allocation20 + $0x1c] ss:$12 sps:$4 sm:$0xff]   ;;  %4103 = vmatprep.subr.bf16.mxu0 %v4781_v31  ;;  %v3110_v31 = vrot.slane %v3101_v9, %v2444_v39 }
 0x9f0   :  { %3503 = vmatpush1.bf16.msra.mxu1 %v4701_v48  ;;  %p5039_p2 = por %p5038_p1, %p5037_p0 }
 0x9f1   :  { %3504 = vmatprep.subr.bf16.mxu1 %v4706_v42 }
 0x9f2   :  { %p5040_p3 = pnand %p5039_p2, %p5033_p13 }
 0x9f4   :  { %3505 = vmatpush1.bf16.msra.mxu1 %v4704_v13 }
 0x9f5   :  { %3506 = vmatprep.subr.bf16.mxu1 %v4709_v7 }
 0x9f8   :  { %3507 = vmatpush1.bf16.msra.mxu1 %v4707_v43 }
 0x9f9   :  { %3508 = vmatprep.subr.bf16.mxu1 %v4712_v46 }
 0x9fc   :  { %3509 = vmatpush1.bf16.msra.mxu1 %v4710_v14 }
 0x9fd   :  { %3510 = vmatprep.subr.bf16.mxu1 %v4715_v57 }
 0xa00   :  { %3511 = vmatpush1.bf16.msra.mxu1 %v4713_v32 }
 0xa01   :  { %3512 = vmatprep.subr.bf16.mxu1 %v4718_v47  ;;  %v4752_v47 = vld [vmem:[#allocation20 + $0x230] ss:$12 sps:$4 sm:$0xff]  }
 0xa04   :  { %3513 = vmatpush1.bf16.msra.mxu1 %v4716_v56 }
 0xa05   :  { %3514 = vmatprep.subr.bf16.mxu1 %v4721_v53  ;;  %v4764_v53 = vld [vmem:[#allocation20 + $0x1e8] ss:$12 sps:$4 sm:$0xff]  }
 0xa08   :  { %3515 = vmatpush1.bf16.msra.mxu1 %v4719_v22  ;;  %v4768_v22 = vld [vmem:[#allocation20 + $0x1d0] ss:$12 sps:$4 sm:$0xff]  }
 0xa09   :  { %3516 = vmatprep.subr.bf16.mxu1 %v4724_v19  ;;  %v4772_v19 = vld [vmem:[#allocation20 + $0x1b8] ss:$12 sps:$4 sm:$0xff]  }
 0xa0c   :  { %3517 = vmatpush1.bf16.msra.mxu1 %v4722_v26  ;;  %v2448_v26 = vsub.s32 2, %v5636_v49 }
 0xa0d   :  { %3518 = vmatprep.subr.bf16.mxu1 %v4727_v16  ;;  %v4776_v16 = vld [vmem:[#allocation20 + $0x1a0] ss:$12 sps:$4 sm:$0xff]  }
 0xa0e   :  { %v3114_v11 = vrot.slane %v3101_v9, %v2448_v26 }
 0xa10   :  { %3519 = vmatpush2.bf16.msra.mxu1 %v4725_v37 }
 0xa11   :  { %3520 = vmatprep.subr.bf16.mxu1 %v4730_v24  ;;  %v2449_v24 = vrot.slane %v2436_v45, %v2448_v26 }
 0xa14   :  { %3521 = vmatpush2.bf16.msra.mxu1 %v4728_v41 }
 0xa15   :  { %3522 = vmatprep.subr.bf16.mxu1 %v4733_v18 }
 0xa18   :  { %3523 = vmatpush2.bf16.msra.mxu1 %v4731_v17  ;;  %v4780_v17 = vld [vmem:[#allocation20 + $0x188] ss:$12 sps:$4 sm:$0xff]  }
 0xa19   :  { %3524 = vmatprep.subr.bf16.mxu1 %v4736_v54 }
 0xa1c   :  { %3525 = vmatpush2.bf16.msra.mxu1 %v4734_v23 }
 0xa1d   :  { %3526 = vmatprep.subr.bf16.mxu1 %v4739_v29 }
 0xa20   :  { %3527 = vmatpush2.bf16.msra.mxu1 %v4737_v36 }
 0xa21   :  { %3528 = vmatprep.subr.bf16.mxu1 %v4742_v60  ;;  %v4784_v60 = vld [vmem:[#allocation20 + $0x98] ss:$12 sps:$4 sm:$0xff]  }
 0xa24   :  { %3529 = vmatpush2.bf16.msra.mxu1 %v4740_v27  ;;  %v4786_v27 = vld [vmem:[#allocation20 + $0x80] ss:$12 sps:$4 sm:$0xff]  }
 0xa25   :  { %3530 = vmatprep.subr.bf16.mxu1 %v4745_v15  ;;  %v4789_v15 = vld [vmem:[#allocation20 + $0x110] ss:$12 sps:$4 sm:$0xff]  }
 0xa28   :  { %3531 = vmatpush2.bf16.msra.mxu1 %v4743_v38  ;;  %v4791_v38 = vld [vmem:[#allocation20 + $0xf8] ss:$12 sps:$4 sm:$0xff]  }
 0xa29   :  { %3532 = vmatprep.subr.bf16.mxu1 %v4748_v40  ;;  %v4793_v40 = vld [vmem:[#allocation20 + $0xe0] ss:$12 sps:$4 sm:$0xff]  }
 0xa2c   :  { %3533 = vmatpush2.bf16.msra.mxu1 %v4746_v58  ;;  %v4795_v58 = vld [vmem:[#allocation20 + $0xc8] ss:$12 sps:$4 sm:$0xff]  }
 0xa2d   :  { %4502 = vmatprep.subr.bf16.mxu1 %v5081_v50 }
 0xa8f   :  { %v2912_v2 = vpop.f32.mrf.mxu1  ;;  %v2993_v55 = vpop.f32.mrf.mxu0 }
 0xa90   :  { %v2913_v63 = vadd.f32 %v2912_v2, %v2872_v12 }
 0xa91   :  { %v2914_v1 = vpop.f32.mrf.mxu1  ;;  %v4500_v48 = vpop.f32.mrf.mxu0 }
 0xa92   :  { %v2915_v42 = vadd.f32 %v2914_v1, %v2874_v3  ;;  %v2999_v13 = vmax.f32 %v2913_v63, 0.0 }
 0xa93   :  { %v2916_v7 = vpop.f32.mrf.mxu1  ;;  %v2996_v43 = vpop.f32.mrf.mxu0 }
 0xa94   :  { %v3000_v46 = vmax.f32 %v2915_v42, 0.0  ;;  %v5649_v56 = vpack.c.bf16 %v2999_v13, %v2999_v13 }
 0xa95   :  { %v2917_v14 = vpop.f32.mrf.mxu1  ;;  %v4501_v57 = vpop.f32.mrf.mxu0 }
 0xa96   :  { %v3003_v32 = vpack.c.bf16 %v3000_v46, %v3000_v46 }
 0xa98   :  { %3534 = vmatprep.mubr.bf16.mxu1 %v3003_v32 }
 0xa99   :  { %3535 = vmatmul.mubr.bf16.vlgmr.msra.gmra.mxu1 %v5649_v56 }
 0xa9a   :  { %4503 = vmatpush3.bf16.msra.mxu1 %v4752_v47  ;;  %4518 = vmatprep.mubr.msk.bf16.mxu1 %vm5082_vm0, %v5081_v50 }
 0xa9b   :  { %4504 = vmatprep.subr.bf16.mxu1 %v5081_v50 }
 0xa9e   :  { %4505 = vmatpush3.bf16.msra.mxu1 %v4756_v21 }
 0xa9f   :  { %4506 = vmatprep.subr.bf16.mxu1 %v5081_v50 }
 0xaa2   :  { %4507 = vmatpush3.bf16.msra.mxu1 %v4760_v35 }
 0xaa3   :  { %4508 = vmatprep.subr.bf16.mxu1 %v5081_v50 }
 0xaa6   :  { %4509 = vmatpush3.bf16.msra.mxu1 %v4764_v53 }
 0xaa7   :  { %4510 = vmatprep.subr.bf16.mxu1 %v5081_v50 }
 0xaaa   :  { %4511 = vmatpush3.bf16.msra.mxu1 %v4768_v22 }
 0xaab   :  { %4512 = vmatprep.subr.bf16.mxu1 %v5081_v50 }
 0xaae   :  { %4513 = vmatpush3.bf16.msra.mxu1 %v4772_v19 }
 0xaaf   :  { %v4088_v37 = vpop.f32.mrf.mxu1  ;;  %4514 = vmatprep.subr.bf16.mxu1 %v5081_v50 }
 0xab1   :  { %v4089_v41 = vpop.f32.mrf.mxu1 }
 0xab2   :  { %v4090_v18 = vadd.f32 %v4089_v41, %v4088_v37  ;;  %4515 = vmatpush3.bf16.msra.mxu1 %v4776_v16 }
 0xab3   :  { %v4091_v54 = vpop.f32.mrf.mxu1  ;;  %4516 = vmatprep.subr.bf16.mxu1 %v5081_v50  ;;  %v4788_v50 = vld [vmem:[#allocation20 + $0x68] ss:$12 sps:$4 sm:$0xff]  }
 0xab4   :  { %v2954_v23 = vadd.f32 %v4090_v18, %v2449_v24 }
 0xab5   :  { %v4092_v29 = vpop.f32.mrf.mxu1 }
 0xab6   :  { %v2994_v59 = vadd.f32 %v2993_v55, %v2954_v23  ;;  %4517 = vmatpush3.bf16.msra.mxu1 %v4780_v17 }
 0xab8   :  { %v3001_v0 = vmax.f32 %v2994_v59, 0.0 }
 0xaba   :  { %v3004_v36 = vpack.c.bf16 %v3001_v0, %v3001_v0 }
 0xabc   :  { %3576 = vmatmul.mubr.bf16.vlgmr.msra.gmra.mxu0 %v3004_v36  ;;  %4519 = vmatmul.mubr.bf16.vlgmr.msra.gmra.mxu1 %v3004_v36 }
 0xabd   :  { %4104 = vmatpush3.bf16.msra.mxu0 %v4782_v51  ;;  %3616 = vmatprep.mubr.bf16.mxu0 %v3003_v32 }
 0xabe   :  { %4105 = vmatprep.subr.bf16.mxu0 %v4783_v33 }
 0xac1   :  { %4106 = vmatpush3.bf16.msra.mxu0 %v4784_v60 }
 0xac2   :  { %4107 = vmatprep.subr.bf16.mxu0 %v4785_v28 }
 0xac5   :  { %4108 = vmatpush3.bf16.msra.mxu0 %v4786_v27 }
 0xac6   :  { %4109 = vmatprep.subr.bf16.mxu0 %v4787_v30 }
 0xac9   :  { %4110 = vmatpush3.bf16.msra.mxu0 %v4788_v50 }
 0xaca   :  { %4111 = vmatprep.subr.bf16.mxu0 %v4789_v15 }
 0xacd   :  { %4112 = vmatpush3.bf16.msra.mxu0 %v4790_v62 }
 0xace   :  { %4113 = vmatprep.subr.bf16.mxu0 %v4791_v38 }
 0xad1   :  { %4114 = vmatpush3.bf16.msra.mxu0 %v4792_v5 }
 0xad2   :  { %4115 = vmatprep.subr.bf16.mxu0 %v4793_v40 }
 0xad5   :  { %4116 = vmatpush3.bf16.msra.mxu0 %v4794_v52 }
 0xad6   :  { %4117 = vmatprep.subr.bf16.mxu0 %v4795_v58 }
 0xad9   :  { %4118 = vmatpush3.bf16.msra.mxu0 %v4796_v61 }
 0xadc   :  { %3617 = vmatmul.mubr.bf16.vlgmr.msra.gmra.mxu0 %v5649_v56 }
 0xb59   :  { %v3536_v44 = vpop.f32.mrf.mxu1 }
 0xb5a   :  { %v3537_v20 = vadd.f32 %v3536_v44, %v3106_v10 }
 0xb5b   :  { %v3538_v4 = vpop.f32.mrf.mxu1 }
 0xb5c   :  { %v3539_v34 = vadd.f32 %v3538_v4, %v3110_v31 }
 0xb5d   :  { %v3540_v25 = vpop.f32.mrf.mxu1 }
 0xb5f   :  { %v3541_v6 = vpop.f32.mrf.mxu1 }
 0xb7c   :  { %v3577_v45 = vpop.f32.mrf.mxu0  ;;  %v3658_v8 = vpop.f32.mrf.mxu1 }
 0xb7d   :  { %v3578_v12 = vadd.f32 %v3577_v45, %v3537_v20 }
 0xb7e   :  { %v3579_v2 = vpop.f32.mrf.mxu0  ;;  %v4520_v55 = vpop.f32.mrf.mxu1 }
 0xb7f   :  { %3664 = vst [vmem:[#allocation21] sm:$0xff] %v3578_v12  ;;  %v3580_v3 = vadd.f32 %v3579_v2, %v3539_v34 }
 0xb80   :  { %v3581_v63 = vpop.f32.mrf.mxu0  ;;  %v3661_v1 = vpop.f32.mrf.mxu1 }
 0xb81   :  { %3665 = vst [vmem:[#allocation21 + $0x8] sm:$0xff] %v3580_v3 }
 0xb82   :  { %v3582_v48 = vpop.f32.mrf.mxu0  ;;  %v4521_v42 = vpop.f32.mrf.mxu1 }
 0xb9c   :  { %v4119_v13 = vpop.f32.mrf.mxu0 }
 0xb9e   :  { %v4120_v7 = vpop.f32.mrf.mxu0 }
 0xb9f   :  { %v4121_v39 = vadd.f32 %v4120_v7, %v4119_v13 }
 0xba0   :  { %v4122_v43 = vpop.f32.mrf.mxu0 }
 0xba1   :  { %v3619_v46 = vadd.f32 %v4121_v39, %v3114_v11 }
 0xba2   :  { %v4123_v14 = vpop.f32.mrf.mxu0 }
 0xba3   :  { %v3659_v57 = vadd.f32 %v3658_v8, %v3619_v46 }
 0xba5   :  { %3666 = vst [vmem:[#allocation21 + $0x10] sm:$0xff] %v3659_v57 }
 0xba6   :  { %5043 = shalt.err (!%p5040_p3)
}
 0xba7   :  { %3676 = dma.vmem_to_hbm [thread:$0]  %s3674_s23, 384, %s5696_s19, [#allocation5]  }
 0xba8   :  { %5064 = dma.done.wait [#allocation5], 384  }
 0xba9   :  { %5065 = vsyncadd [#allocation5], 4294966912 }
 0xbaa   :  { %3680 = vsyncpa [#allocation4], 1 }
 0xbab   :  { %3681 = vsyncpa [#allocation7], 1 }
 0xbac   :  { %3682 = vsyncpa [#allocation10], 1 }
 0xbad   :  { %3683 = vsyncpa [#allocation13], 1 }
 0xbae   :  { %3684 = vsyncpa [#allocation16], 1 }
 0xbaf   :  { %3685 = vsyncpa [#allocation19], 1 }
 0xbb0   :  { %3686 = vsyncpa [#allocation5], 1 }

</bundles_post_ra>
